<compile_context>
chip_gen: v6e
topology: v6e:2x2x1
jax: 0.10.0
libtpu: 0.0.40
codegen_flags: <defaults>
</compile_context>

<pallas_src>
import jax
import jax.numpy as jnp
from jax import lax
from jax.experimental import pallas as pl
from jax.experimental.pallas import tpu as pltpu

# ----------------------------- config ---------------------------------------
INPUT_LENGTH = 24     # raw feature width of x
SEQ_LENGTH = 8        # S
TGT_LENGTH = 4        # per-arch output width
NARCHS = 1
NOP = 1               # op-embedding dim
NHIDDEN = 32          # H  (4H == 128 -> each gate row is exactly one lane tile)
NLAYERS = 2
BATCH = 2             # B

NIN = INPUT_LENGTH - 1 + NOP          # LSTM layer-0 feature dim (= 24)
NOUT = NARCHS * TGT_LENGTH            # final linear output dim (= 4)

LANE = 128                            # TPU lane width; also 4*NHIDDEN
NOP_PAD = 64                          # one-hot width for the 50-entry op table

assert 4 * NHIDDEN == LANE


# ------------------------- packed-parameter layout ---------------------------
def _make_layout():
    off = 0
    layout = {}

    def alloc(name, nrows):
        nonlocal off
        layout[name] = off
        off += -(-nrows // 8) * 8          # 8-sublane-aligned segments

    alloc("stats", 1)           # row: [std[1], mean[1], 0, ...]
    alloc("op_proj", NOP_PAD)   # (64,128)  op_embed @ W_ih0[:NOP]  (rows >= 50 zero)
    alloc("w_x", INPUT_LENGTH)  # (24,128)  W_ih0[NOP:] rows in raw-x column order
    alloc("b0", 1)              # (1,128)   b_ih0 + b_hh0
    alloc("w_hh0", NHIDDEN)
    alloc("w_ih1", NHIDDEN)
    alloc("b1", 1)
    alloc("w_hh1", NHIDDEN)
    alloc("lin_w", NHIDDEN)     # (32,128)  cols >= NOUT zero (lane-dense output)
    alloc("lin_b", 1)
    layout["total"] = off
    return layout


_L = _make_layout()


# ----------------------------- fused Pallas kernel ---------------------------
def _fused_seq_em_lstm_kernel(x_ref, w_ref, out_ref, gx_scr, h_scr):
    """Embedding + 2-layer LSTM + ReLU + Linear, fully fused.

    x_ref  : (B, S, INPUT_LENGTH)  raw, un-normalized model input
    w_ref  : (R, 128)              packed parameter slab (see _make_layout)
    out_ref: (B*S, 128)            lane-dense padded output; cols >= NOUT are 0
    gx_scr : VMEM (B, S, 4H)       staged x-projections (per-step read is a VMEM
                                   load, not a vreg sublane extract on the chain)
    h_scr  : VMEM (B, S, H)        inter-layer hidden states (never leave VMEM)
    Gate order is PyTorch's (i, f, g, o); biases are pre-fused b_ih + b_hh.
    """
    B, S, F = x_ref.shape
    H = h_scr.shape[-1]
    G = 4 * H

    x = x_ref[...]
    xf = x.reshape(B * S, F)

    # ---- op-embedding gather, done in-kernel as a one-hot MXU matmul --------
    std1 = w_ref[_L["stats"]:_L["stats"] + 1, 0:1]            # (1,1)
    mean1 = w_ref[_L["stats"]:_L["stats"] + 1, 1:2]           # (1,1)
    ids = (x[:, :, 1:2] * std1 + mean1).astype(jnp.int32)     # (B,S,1) trunc->0
    iota = lax.broadcasted_iota(jnp.int32, (B, S, NOP_PAD), 2)
    onehot = (iota == ids).astype(jnp.float32).reshape(B * S, NOP_PAD)

    # ---- layer 0: hoisted input projection (embedding path + raw-x path + bias)
    gx0 = (jnp.dot(onehot, w_ref[_L["op_proj"]:_L["op_proj"] + NOP_PAD, :],
                   preferred_element_type=jnp.float32)
           + jnp.dot(xf, w_ref[_L["w_x"]:_L["w_x"] + F, :],
                     preferred_element_type=jnp.float32)
           + w_ref[_L["b0"]:_L["b0"] + 1, :])                 # (B*S, 128)
    gx_scr[...] = gx0.reshape(B, S, G)

    def recurrence(w_hh):
        # S is static and tiny: full unroll, only h @ W_hh + gate math per step.
        h = jnp.zeros((B, H), jnp.float32)
        c = jnp.zeros((B, H), jnp.float32)
        for t in range(S):
            g = gx_scr[:, t, :] + jnp.dot(h, w_hh,
                                          preferred_element_type=jnp.float32)
            sig = jax.nn.sigmoid(g)            # full 128-lane EUP ops
            th = jnp.tanh(g)
            i_g = sig[:, 0:H]
            f_g = sig[:, H:2 * H]
            o_g = sig[:, 3 * H:4 * H]
            g_g = th[:, 2 * H:3 * H]
            c = f_g * c + i_g * g_g
            h = o_g * jnp.tanh(c)
            h_scr[:, t, :] = h

    recurrence(w_ref[_L["w_hh0"]:_L["w_hh0"] + H, :])

    # ---- layer 1 -------------------------------------------------------------
    h_flat = h_scr[...].reshape(B * S, H)
    gx1 = (jnp.dot(h_flat, w_ref[_L["w_ih1"]:_L["w_ih1"] + H, :],
                   preferred_element_type=jnp.float32)
           + w_ref[_L["b1"]:_L["b1"] + 1, :])
    gx_scr[...] = gx1.reshape(B, S, G)
    recurrence(w_ref[_L["w_hh1"]:_L["w_hh1"] + H, :])

    # ---- epilogue: ReLU + Linear, lane-dense 128-wide store ------------------
    h_flat = h_scr[...].reshape(B * S, H)
    out_ref[...] = (jnp.dot(jnp.maximum(h_flat, 0.0),
                            w_ref[_L["lin_w"]:_L["lin_w"] + H, :],
                            preferred_element_type=jnp.float32)
                    + w_ref[_L["lin_b"]:_L["lin_b"] + 1, :])


_VMEM_SPEC = pl.BlockSpec(memory_space=pltpu.MemorySpace.VMEM)


def seq_em_lstm_forward_impl(x, packed):
    B, S, _ = x.shape
    out = pl.pallas_call(
        _fused_seq_em_lstm_kernel,
        out_shape=jax.ShapeDtypeStruct((B * S, LANE), jnp.float32),
        in_specs=[_VMEM_SPEC, _VMEM_SPEC],          # 2 input DMAs total
        out_specs=_VMEM_SPEC,
        scratch_shapes=[pltpu.VMEM((B, S, 4 * NHIDDEN), jnp.float32),
                        pltpu.VMEM((B, S, NHIDDEN), jnp.float32)],
        # No grid / dimension_semantics on purpose: at B=2 the kernel is
        # dispatch-bound; a leading "parallel" batch grid axis only pays off at
        # serving-sized batches (v7x's second TensorCore).
    )(x, packed)
    return out.reshape(B, S, LANE)[:, :, :NOUT]     # free reshape + tiny slice


seq_em_lstm_forward = jax.jit(seq_em_lstm_forward_impl)


# ----------------------------- parameters -----------------------------------
def init_params(key):
    ks = jax.random.split(key, 4 + 4 * NLAYERS)
    kidx = 0

    def u(key, shape, bound):
        return jax.random.uniform(key, shape, jnp.float32, -bound, bound)

    params = {}
    params["op_embed"] = jax.random.normal(ks[kidx], (50, NOP), jnp.float32)
    kidx += 1

    kbound = 1.0 / (NHIDDEN ** 0.5)
    lstm = []
    for layer in range(NLAYERS):
        d_in = NIN if layer == 0 else NHIDDEN
        w_ih = u(ks[kidx], (d_in, 4 * NHIDDEN), kbound); kidx += 1
        w_hh = u(ks[kidx], (NHIDDEN, 4 * NHIDDEN), kbound); kidx += 1
        b_ih = u(ks[kidx], (4 * NHIDDEN,), kbound); kidx += 1
        b_hh = u(ks[kidx], (4 * NHIDDEN,), kbound); kidx += 1
        lstm.append((w_ih, w_hh, (b_ih + b_hh).reshape(1, 4 * NHIDDEN)))
    params["lstm"] = lstm

    lbound = 1.0 / (NHIDDEN ** 0.5)
    params["lin_w"] = u(ks[kidx], (NHIDDEN, NOUT), lbound); kidx += 1
    params["lin_b"] = u(ks[kidx], (NOUT,), lbound).reshape(1, NOUT); kidx += 1

    params["mean"] = jnp.zeros((INPUT_LENGTH,), jnp.float32)   # stats.npz stand-in
    params["std"] = jnp.ones((INPUT_LENGTH,), jnp.float32)
    return params


def pack_params(params):
    """Pre-concatenate every parameter into one 128-lane, 8-row-aligned f32 slab.

    Also folds init-time algebra so the kernel never builds `feats`:
      * op_proj = op_embed @ W_ih0[:NOP]    (embedding path of layer 0)
      * w_x     = W_ih0[NOP:] rows scattered back to raw-x column order
                  (x column 1 gets a zero row: it only feeds the embedding)
    """
    w_ih0, w_hh0, b0 = params["lstm"][0]
    w_ih1, w_hh1, b1 = params["lstm"][1]
    G = 4 * NHIDDEN

    op_proj = params["op_embed"] @ w_ih0[:NOP, :]                      # (50, G)
    xcols = jnp.array([0] + list(range(2, 23)) + list(range(23, INPUT_LENGTH)),
                      dtype=jnp.int32)                                 # rest -> x cols
    w_x = jnp.zeros((INPUT_LENGTH, G), jnp.float32).at[xcols, :].set(w_ih0[NOP:, :])
    stats = jnp.stack([params["std"][1], params["mean"][1]]).reshape(1, 2)

    packed = jnp.zeros((_L["total"], LANE), jnp.float32)
    for name, a in (("stats", stats), ("op_proj", op_proj), ("w_x", w_x),
                    ("b0", b0), ("w_hh0", w_hh0), ("w_ih1", w_ih1),
                    ("b1", b1), ("w_hh1", w_hh1),
                    ("lin_w", params["lin_w"]), ("lin_b", params["lin_b"])):
        r, c = a.shape
        packed = packed.at[_L[name]:_L[name] + r, :c].set(a.astype(jnp.float32))
    return packed


# ----------------------------- pure-JAX reference ---------------------------
def get_embeddings(params, x):
    ori = (x * params["std"] + params["mean"]).astype(jnp.int32)
    emb = params["op_embed"][ori[:, :, 1]]                  # (B, S, NOP)
    rest = jnp.concatenate([x[:, :, 0:1], x[:, :, 2:23]], axis=2)
    rest = jnp.concatenate([rest, x[:, :, 23:]], axis=2)    # (B, S, 23)
    return jnp.concatenate([emb, rest], axis=2)             # (B, S, NIN)


def _lstm_layer_ref(x_bt, w_ih, w_hh, bias):
    B, S, _ = x_bt.shape
    H = w_hh.shape[0]

    def step(carry, x_t):
        h, c = carry
        g = x_t @ w_ih + h @ w_hh + bias
        i_g = jax.nn.sigmoid(g[:, 0:H])
        f_g = jax.nn.sigmoid(g[:, H:2 * H])
        g_g = jnp.tanh(g[:, 2 * H:3 * H])
        o_g = jax.nn.sigmoid(g[:, 3 * H:4 * H])
        c = f_g * c + i_g * g_g
        h = o_g * jnp.tanh(c)
        return (h, c), h

    h0 = jnp.zeros((B, H), jnp.float32)
    c0 = jnp.zeros((B, H), jnp.float32)
    _, hs = lax.scan(step, (h0, c0), jnp.transpose(x_bt, (1, 0, 2)))
    return jnp.transpose(hs, (1, 0, 2))


def reference_forward(params, x):
    h = get_embeddings(params, x)
    for (w_ih, w_hh, bias) in params["lstm"]:
        h = _lstm_layer_ref(h, w_ih, w_hh, bias)
    h = jnp.maximum(h, 0.0)
    return h @ params["lin_w"] + params["lin_b"]


# ----------------------------- main ------------------------------------------
if __name__ == "__main__":
    key = jax.random.PRNGKey(0)
    kp, kx, kop = jax.random.split(key, 3)

    params = init_params(kp)
    packed = pack_params(params)

    # x: (B, S, INPUT_LENGTH); column 1 holds op ids in [0, 50)
    x = jax.random.normal(kx, (BATCH, SEQ_LENGTH, INPUT_LENGTH), jnp.float32)
    op_ids = jax.random.randint(kop, (BATCH, SEQ_LENGTH), 0, 50).astype(jnp.float32)
    x = x.at[:, :, 1].set(op_ids)

    out = jax.block_until_ready(seq_em_lstm_forward(x, packed))
    ref = jax.block_until_ready(reference_forward(params, x))

    assert out.shape == (BATCH, SEQ_LENGTH, NOUT), out.shape
    assert jnp.allclose(out, ref, atol=1e-4, rtol=1e-4), (
        float(jnp.max(jnp.abs(out - ref))))

    print("KERNEL_OK")
</pallas_src>

<mosaic_0001>
module attributes {stable_mosaic.version = 11 : i64} {
  func.func @_fused_seq_em_lstm_kernel(%arg0: memref<2x8x24xf32, #tpu.memory_space<vmem>>, %arg1: memref<248x128xf32, #tpu.memory_space<vmem>>, %arg2: memref<16x128xf32, #tpu.memory_space<vmem>>, %arg3: memref<2x8x128xf32, #tpu.memory_space<vmem>>, %arg4: memref<2x8x32xf32, #tpu.memory_space<vmem>>) attributes {dimension_semantics = [], scalar_prefetch = 0 : i64, scratch_operands = 2 : i64, tpu.core_type = #tpu.core_type<tc>} {
    %c0 = arith.constant 0 : index
    %c0_0 = arith.constant 0 : index
    %c0_1 = arith.constant 0 : index
    %0 = vector.load %arg0[%c0, %c0_0, %c0_1] : memref<2x8x24xf32, #tpu.memory_space<vmem>>, vector<2x8x24xf32>
    %1 = vector.shape_cast %0 : vector<2x8x24xf32> to vector<16x24xf32>
    %c0_2 = arith.constant 0 : index
    %c0_3 = arith.constant 0 : index
    %2 = vector.load %arg1[%c0_2, %c0_3] : memref<248x128xf32, #tpu.memory_space<vmem>>, vector<1x1xf32>
    %c0_4 = arith.constant 0 : index
    %c1 = arith.constant 1 : index
    %3 = vector.load %arg1[%c0_4, %c1] : memref<248x128xf32, #tpu.memory_space<vmem>>, vector<1x1xf32>
    %4 = vector.extract_strided_slice %0 {offsets = [0, 0, 1], sizes = [2, 8, 1], strides = [1, 1, 1]} : vector<2x8x24xf32> to vector<2x8x1xf32>
    %5 = vector.shape_cast %2 : vector<1x1xf32> to vector<1x1x1xf32>
    %6 = vector.broadcast %5 : vector<1x1x1xf32> to vector<2x8x1xf32>
    %7 = arith.mulf %4, %6 : vector<2x8x1xf32>
    %8 = vector.shape_cast %3 : vector<1x1xf32> to vector<1x1x1xf32>
    %9 = vector.broadcast %8 : vector<1x1x1xf32> to vector<2x8x1xf32>
    %10 = arith.addf %7, %9 : vector<2x8x1xf32>
    %11 = arith.fptosi %10 : vector<2x8x1xf32> to vector<2x8x1xi32>
    %12 = tpu.iota {dimensions = array<i32: 2>} : vector<2x8x64xi32>
    %13 = vector.broadcast %11 : vector<2x8x1xi32> to vector<2x8x64xi32>
    %14 = arith.cmpi eq, %12, %13 : vector<2x8x64xi32>
    %15 = arith.extui %14 : vector<2x8x64xi1> to vector<2x8x64xi32>
    %16 = arith.sitofp %15 : vector<2x8x64xi32> to vector<2x8x64xf32>
    %17 = vector.shape_cast %16 : vector<2x8x64xf32> to vector<16x64xf32>
    %c8 = arith.constant 8 : index
    %c0_5 = arith.constant 0 : index
    %18 = vector.load %arg1[%c8, %c0_5] : memref<248x128xf32, #tpu.memory_space<vmem>>, vector<64x128xf32>
    %cst = arith.constant dense<0.000000e+00> : vector<16x128xf32>
    %19 = tpu.matmul %17, %18, %cst {dimension_numbers = #tpu.dot_dimension_numbers<[1], [0], [0], [1], [0, 0, 1, 1], [], []>} : vector<16x64xf32>, vector<64x128xf32>, vector<16x128xf32> -> vector<16x128xf32>
    %c72 = arith.constant 72 : index
    %c0_6 = arith.constant 0 : index
    %20 = vector.load %arg1[%c72, %c0_6] : memref<248x128xf32, #tpu.memory_space<vmem>>, vector<24x128xf32>
    %cst_7 = arith.constant dense<0.000000e+00> : vector<16x128xf32>
    %21 = tpu.matmul %1, %20, %cst_7 {dimension_numbers = #tpu.dot_dimension_numbers<[1], [0], [0], [1], [0, 0, 1, 1], [], []>} : vector<16x24xf32>, vector<24x128xf32>, vector<16x128xf32> -> vector<16x128xf32>
    %22 = arith.addf %19, %21 : vector<16x128xf32>
    %c96 = arith.constant 96 : index
    %c0_8 = arith.constant 0 : index
    %23 = vector.load %arg1[%c96, %c0_8] : memref<248x128xf32, #tpu.memory_space<vmem>>, vector<1x128xf32>
    %24 = vector.broadcast %23 : vector<1x128xf32> to vector<16x128xf32>
    %25 = arith.addf %22, %24 : vector<16x128xf32>
    %26 = vector.shape_cast %25 : vector<16x128xf32> to vector<2x8x128xf32>
    %c0_9 = arith.constant 0 : index
    %c0_10 = arith.constant 0 : index
    %c0_11 = arith.constant 0 : index
    %27 = vector.load %arg3[%c0_9, %c0_10, %c0_11] : memref<2x8x128xf32, #tpu.memory_space<vmem>>, vector<2x8x128xf32>
    tpu.vector_store %arg3[%c0_9, %c0_10, %c0_11], %26 {strides = array<i32>} : memref<2x8x128xf32, #tpu.memory_space<vmem>>, vector<2x8x128xf32>,
    %c104 = arith.constant 104 : index
    %c0_12 = arith.constant 0 : index
    %28 = vector.load %arg1[%c104, %c0_12] : memref<248x128xf32, #tpu.memory_space<vmem>>, vector<32x128xf32>
    %cst_13 = arith.constant 0.000000e+00 : f32
    %29 = vector.broadcast %cst_13 : f32 to vector<2x32xf32>
    %cst_14 = arith.constant 0.000000e+00 : f32
    %30 = vector.broadcast %cst_14 : f32 to vector<2x32xf32>
    %c0_15 = arith.constant 0 : index
    %c0_16 = arith.constant 0 : index
    %c0_17 = arith.constant 0 : index
    %31 = vector.load %arg3[%c0_15, %c0_16, %c0_17] : memref<2x8x128xf32, #tpu.memory_space<vmem>>, vector<2x1x128xf32>
    %32 = vector.shape_cast %31 : vector<2x1x128xf32> to vector<2x128xf32>
    %cst_18 = arith.constant dense<0.000000e+00> : vector<2x128xf32>
    %33 = tpu.matmul %29, %28, %cst_18 {dimension_numbers = #tpu.dot_dimension_numbers<[1], [0], [0], [1], [0, 0, 1, 1], [], []>} : vector<2x32xf32>, vector<32x128xf32>, vector<2x128xf32> -> vector<2x128xf32>
    %34 = arith.addf %32, %33 : vector<2x128xf32>
    %35 = arith.negf %34 : vector<2x128xf32>
    %36 = math.exp %35 : vector<2x128xf32>
    %cst_19 = arith.constant 1.000000e+00 : f32
    %37 = vector.broadcast %cst_19 : f32 to vector<2x128xf32>
    %38 = arith.addf %37, %36 : vector<2x128xf32>
    %39 = arith.divf %37, %38 : vector<2x128xf32>
    %40 = math.tanh %34 : vector<2x128xf32>
    %41 = vector.extract_strided_slice %39 {offsets = [0, 0], sizes = [2, 32], strides = [1, 1]} : vector<2x128xf32> to vector<2x32xf32>
    %42 = vector.extract_strided_slice %39 {offsets = [0, 32], sizes = [2, 32], strides = [1, 1]} : vector<2x128xf32> to vector<2x32xf32>
    %43 = vector.extract_strided_slice %39 {offsets = [0, 96], sizes = [2, 32], strides = [1, 1]} : vector<2x128xf32> to vector<2x32xf32>
    %44 = vector.extract_strided_slice %40 {offsets = [0, 64], sizes = [2, 32], strides = [1, 1]} : vector<2x128xf32> to vector<2x32xf32>
    %45 = arith.mulf %42, %30 : vector<2x32xf32>
    %46 = arith.mulf %41, %44 : vector<2x32xf32>
    %47 = arith.addf %45, %46 : vector<2x32xf32>
    %48 = math.tanh %47 : vector<2x32xf32>
    %49 = arith.mulf %43, %48 : vector<2x32xf32>
    %c0_20 = arith.constant 0 : index
    %c0_21 = arith.constant 0 : index
    %c0_22 = arith.constant 0 : index
    %50 = vector.load %arg4[%c0_20, %c0_21, %c0_22] : memref<2x8x32xf32, #tpu.memory_space<vmem>>, vector<2x1x32xf32>
    %51 = vector.shape_cast %50 : vector<2x1x32xf32> to vector<2x32xf32>
    %52 = vector.shape_cast %49 : vector<2x32xf32> to vector<2x1x32xf32>
    tpu.vector_store %arg4[%c0_20, %c0_21, %c0_22], %52 {strides = array<i32>} : memref<2x8x32xf32, #tpu.memory_space<vmem>>, vector<2x1x32xf32>,
    %c0_23 = arith.constant 0 : index
    %c1_24 = arith.constant 1 : index
    %c0_25 = arith.constant 0 : index
    %53 = vector.load %arg3[%c0_23, %c1_24, %c0_25] : memref<2x8x128xf32, #tpu.memory_space<vmem>>, vector<2x1x128xf32>
    %54 = vector.shape_cast %53 : vector<2x1x128xf32> to vector<2x128xf32>
    %cst_26 = arith.constant dense<0.000000e+00> : vector<2x128xf32>
    %55 = tpu.matmul %49, %28, %cst_26 {dimension_numbers = #tpu.dot_dimension_numbers<[1], [0], [0], [1], [0, 0, 1, 1], [], []>} : vector<2x32xf32>, vector<32x128xf32>, vector<2x128xf32> -> vector<2x128xf32>
    %56 = arith.addf %54, %55 : vector<2x128xf32>
    %57 = arith.negf %56 : vector<2x128xf32>
    %58 = math.exp %57 : vector<2x128xf32>
    %cst_27 = arith.constant 1.000000e+00 : f32
    %59 = vector.broadcast %cst_27 : f32 to vector<2x128xf32>
    %60 = arith.addf %59, %58 : vector<2x128xf32>
    %61 = arith.divf %59, %60 : vector<2x128xf32>
    %62 = math.tanh %56 : vector<2x128xf32>
    %63 = vector.extract_strided_slice %61 {offsets = [0, 0], sizes = [2, 32], strides = [1, 1]} : vector<2x128xf32> to vector<2x32xf32>
    %64 = vector.extract_strided_slice %61 {offsets = [0, 32], sizes = [2, 32], strides = [1, 1]} : vector<2x128xf32> to vector<2x32xf32>
    %65 = vector.extract_strided_slice %61 {offsets = [0, 96], sizes = [2, 32], strides = [1, 1]} : vector<2x128xf32> to vector<2x32xf32>
    %66 = vector.extract_strided_slice %62 {offsets = [0, 64], sizes = [2, 32], strides = [1, 1]} : vector<2x128xf32> to vector<2x32xf32>
    %67 = arith.mulf %64, %47 : vector<2x32xf32>
    %68 = arith.mulf %63, %66 : vector<2x32xf32>
    %69 = arith.addf %67, %68 : vector<2x32xf32>
    %70 = math.tanh %69 : vector<2x32xf32>
    %71 = arith.mulf %65, %70 : vector<2x32xf32>
    %c0_28 = arith.constant 0 : index
    %c1_29 = arith.constant 1 : index
    %c0_30 = arith.constant 0 : index
    %72 = vector.load %arg4[%c0_28, %c1_29, %c0_30] : memref<2x8x32xf32, #tpu.memory_space<vmem>>, vector<2x1x32xf32>
    %73 = vector.shape_cast %72 : vector<2x1x32xf32> to vector<2x32xf32>
    %74 = vector.shape_cast %71 : vector<2x32xf32> to vector<2x1x32xf32>
    tpu.vector_store %arg4[%c0_28, %c1_29, %c0_30], %74 {strides = array<i32>} : memref<2x8x32xf32, #tpu.memory_space<vmem>>, vector<2x1x32xf32>,
    %c0_31 = arith.constant 0 : index
    %c2 = arith.constant 2 : index
    %c0_32 = arith.constant 0 : index
    %75 = vector.load %arg3[%c0_31, %c2, %c0_32] : memref<2x8x128xf32, #tpu.memory_space<vmem>>, vector<2x1x128xf32>
    %76 = vector.shape_cast %75 : vector<2x1x128xf32> to vector<2x128xf32>
    %cst_33 = arith.constant dense<0.000000e+00> : vector<2x128xf32>
    %77 = tpu.matmul %71, %28, %cst_33 {dimension_numbers = #tpu.dot_dimension_numbers<[1], [0], [0], [1], [0, 0, 1, 1], [], []>} : vector<2x32xf32>, vector<32x128xf32>, vector<2x128xf32> -> vector<2x128xf32>
    %78 = arith.addf %76, %77 : vector<2x128xf32>
    %79 = arith.negf %78 : vector<2x128xf32>
    %80 = math.exp %79 : vector<2x128xf32>
    %cst_34 = arith.constant 1.000000e+00 : f32
    %81 = vector.broadcast %cst_34 : f32 to vector<2x128xf32>
    %82 = arith.addf %81, %80 : vector<2x128xf32>
    %83 = arith.divf %81, %82 : vector<2x128xf32>
    %84 = math.tanh %78 : vector<2x128xf32>
    %85 = vector.extract_strided_slice %83 {offsets = [0, 0], sizes = [2, 32], strides = [1, 1]} : vector<2x128xf32> to vector<2x32xf32>
    %86 = vector.extract_strided_slice %83 {offsets = [0, 32], sizes = [2, 32], strides = [1, 1]} : vector<2x128xf32> to vector<2x32xf32>
    %87 = vector.extract_strided_slice %83 {offsets = [0, 96], sizes = [2, 32], strides = [1, 1]} : vector<2x128xf32> to vector<2x32xf32>
    %88 = vector.extract_strided_slice %84 {offsets = [0, 64], sizes = [2, 32], strides = [1, 1]} : vector<2x128xf32> to vector<2x32xf32>
    %89 = arith.mulf %86, %69 : vector<2x32xf32>
    %90 = arith.mulf %85, %88 : vector<2x32xf32>
    %91 = arith.addf %89, %90 : vector<2x32xf32>
    %92 = math.tanh %91 : vector<2x32xf32>
    %93 = arith.mulf %87, %92 : vector<2x32xf32>
    %c0_35 = arith.constant 0 : index
    %c2_36 = arith.constant 2 : index
    %c0_37 = arith.constant 0 : index
    %94 = vector.load %arg4[%c0_35, %c2_36, %c0_37] : memref<2x8x32xf32, #tpu.memory_space<vmem>>, vector<2x1x32xf32>
    %95 = vector.shape_cast %94 : vector<2x1x32xf32> to vector<2x32xf32>
    %96 = vector.shape_cast %93 : vector<2x32xf32> to vector<2x1x32xf32>
    tpu.vector_store %arg4[%c0_35, %c2_36, %c0_37], %96 {strides = array<i32>} : memref<2x8x32xf32, #tpu.memory_space<vmem>>, vector<2x1x32xf32>,
    %c0_38 = arith.constant 0 : index
    %c3 = arith.constant 3 : index
    %c0_39 = arith.constant 0 : index
    %97 = vector.load %arg3[%c0_38, %c3, %c0_39] : memref<2x8x128xf32, #tpu.memory_space<vmem>>, vector<2x1x128xf32>
    %98 = vector.shape_cast %97 : vector<2x1x128xf32> to vector<2x128xf32>
    %cst_40 = arith.constant dense<0.000000e+00> : vector<2x128xf32>
    %99 = tpu.matmul %93, %28, %cst_40 {dimension_numbers = #tpu.dot_dimension_numbers<[1], [0], [0], [1], [0, 0, 1, 1], [], []>} : vector<2x32xf32>, vector<32x128xf32>, vector<2x128xf32> -> vector<2x128xf32>
    %100 = arith.addf %98, %99 : vector<2x128xf32>
    %101 = arith.negf %100 : vector<2x128xf32>
    %102 = math.exp %101 : vector<2x128xf32>
    %cst_41 = arith.constant 1.000000e+00 : f32
    %103 = vector.broadcast %cst_41 : f32 to vector<2x128xf32>
    %104 = arith.addf %103, %102 : vector<2x128xf32>
    %105 = arith.divf %103, %104 : vector<2x128xf32>
    %106 = math.tanh %100 : vector<2x128xf32>
    %107 = vector.extract_strided_slice %105 {offsets = [0, 0], sizes = [2, 32], strides = [1, 1]} : vector<2x128xf32> to vector<2x32xf32>
    %108 = vector.extract_strided_slice %105 {offsets = [0, 32], sizes = [2, 32], strides = [1, 1]} : vector<2x128xf32> to vector<2x32xf32>
    %109 = vector.extract_strided_slice %105 {offsets = [0, 96], sizes = [2, 32], strides = [1, 1]} : vector<2x128xf32> to vector<2x32xf32>
    %110 = vector.extract_strided_slice %106 {offsets = [0, 64], sizes = [2, 32], strides = [1, 1]} : vector<2x128xf32> to vector<2x32xf32>
    %111 = arith.mulf %108, %91 : vector<2x32xf32>
    %112 = arith.mulf %107, %110 : vector<2x32xf32>
    %113 = arith.addf %111, %112 : vector<2x32xf32>
    %114 = math.tanh %113 : vector<2x32xf32>
    %115 = arith.mulf %109, %114 : vector<2x32xf32>
    %c0_42 = arith.constant 0 : index
    %c3_43 = arith.constant 3 : index
    %c0_44 = arith.constant 0 : index
    %116 = vector.load %arg4[%c0_42, %c3_43, %c0_44] : memref<2x8x32xf32, #tpu.memory_space<vmem>>, vector<2x1x32xf32>
    %117 = vector.shape_cast %116 : vector<2x1x32xf32> to vector<2x32xf32>
    %118 = vector.shape_cast %115 : vector<2x32xf32> to vector<2x1x32xf32>
    tpu.vector_store %arg4[%c0_42, %c3_43, %c0_44], %118 {strides = array<i32>} : memref<2x8x32xf32, #tpu.memory_space<vmem>>, vector<2x1x32xf32>,
    %c0_45 = arith.constant 0 : index
    %c4 = arith.constant 4 : index
    %c0_46 = arith.constant 0 : index
    %119 = vector.load %arg3[%c0_45, %c4, %c0_46] : memref<2x8x128xf32, #tpu.memory_space<vmem>>, vector<2x1x128xf32>
    %120 = vector.shape_cast %119 : vector<2x1x128xf32> to vector<2x128xf32>
    %cst_47 = arith.constant dense<0.000000e+00> : vector<2x128xf32>
    %121 = tpu.matmul %115, %28, %cst_47 {dimension_numbers = #tpu.dot_dimension_numbers<[1], [0], [0], [1], [0, 0, 1, 1], [], []>} : vector<2x32xf32>, vector<32x128xf32>, vector<2x128xf32> -> vector<2x128xf32>
    %122 = arith.addf %120, %121 : vector<2x128xf32>
    %123 = arith.negf %122 : vector<2x128xf32>
    %124 = math.exp %123 : vector<2x128xf32>
    %cst_48 = arith.constant 1.000000e+00 : f32
    %125 = vector.broadcast %cst_48 : f32 to vector<2x128xf32>
    %126 = arith.addf %125, %124 : vector<2x128xf32>
    %127 = arith.divf %125, %126 : vector<2x128xf32>
    %128 = math.tanh %122 : vector<2x128xf32>
    %129 = vector.extract_strided_slice %127 {offsets = [0, 0], sizes = [2, 32], strides = [1, 1]} : vector<2x128xf32> to vector<2x32xf32>
    %130 = vector.extract_strided_slice %127 {offsets = [0, 32], sizes = [2, 32], strides = [1, 1]} : vector<2x128xf32> to vector<2x32xf32>
    %131 = vector.extract_strided_slice %127 {offsets = [0, 96], sizes = [2, 32], strides = [1, 1]} : vector<2x128xf32> to vector<2x32xf32>
    %132 = vector.extract_strided_slice %128 {offsets = [0, 64], sizes = [2, 32], strides = [1, 1]} : vector<2x128xf32> to vector<2x32xf32>
    %133 = arith.mulf %130, %113 : vector<2x32xf32>
    %134 = arith.mulf %129, %132 : vector<2x32xf32>
    %135 = arith.addf %133, %134 : vector<2x32xf32>
    %136 = math.tanh %135 : vector<2x32xf32>
    %137 = arith.mulf %131, %136 : vector<2x32xf32>
    %c0_49 = arith.constant 0 : index
    %c4_50 = arith.constant 4 : index
    %c0_51 = arith.constant 0 : index
    %138 = vector.load %arg4[%c0_49, %c4_50, %c0_51] : memref<2x8x32xf32, #tpu.memory_space<vmem>>, vector<2x1x32xf32>
    %139 = vector.shape_cast %138 : vector<2x1x32xf32> to vector<2x32xf32>
    %140 = vector.shape_cast %137 : vector<2x32xf32> to vector<2x1x32xf32>
    tpu.vector_store %arg4[%c0_49, %c4_50, %c0_51], %140 {strides = array<i32>} : memref<2x8x32xf32, #tpu.memory_space<vmem>>, vector<2x1x32xf32>,
    %c0_52 = arith.constant 0 : index
    %c5 = arith.constant 5 : index
    %c0_53 = arith.constant 0 : index
    %141 = vector.load %arg3[%c0_52, %c5, %c0_53] : memref<2x8x128xf32, #tpu.memory_space<vmem>>, vector<2x1x128xf32>
    %142 = vector.shape_cast %141 : vector<2x1x128xf32> to vector<2x128xf32>
    %cst_54 = arith.constant dense<0.000000e+00> : vector<2x128xf32>
    %143 = tpu.matmul %137, %28, %cst_54 {dimension_numbers = #tpu.dot_dimension_numbers<[1], [0], [0], [1], [0, 0, 1, 1], [], []>} : vector<2x32xf32>, vector<32x128xf32>, vector<2x128xf32> -> vector<2x128xf32>
    %144 = arith.addf %142, %143 : vector<2x128xf32>
    %145 = arith.negf %144 : vector<2x128xf32>
    %146 = math.exp %145 : vector<2x128xf32>
    %cst_55 = arith.constant 1.000000e+00 : f32
    %147 = vector.broadcast %cst_55 : f32 to vector<2x128xf32>
    %148 = arith.addf %147, %146 : vector<2x128xf32>
    %149 = arith.divf %147, %148 : vector<2x128xf32>
    %150 = math.tanh %144 : vector<2x128xf32>
    %151 = vector.extract_strided_slice %149 {offsets = [0, 0], sizes = [2, 32], strides = [1, 1]} : vector<2x128xf32> to vector<2x32xf32>
    %152 = vector.extract_strided_slice %149 {offsets = [0, 32], sizes = [2, 32], strides = [1, 1]} : vector<2x128xf32> to vector<2x32xf32>
    %153 = vector.extract_strided_slice %149 {offsets = [0, 96], sizes = [2, 32], strides = [1, 1]} : vector<2x128xf32> to vector<2x32xf32>
    %154 = vector.extract_strided_slice %150 {offsets = [0, 64], sizes = [2, 32], strides = [1, 1]} : vector<2x128xf32> to vector<2x32xf32>
    %155 = arith.mulf %152, %135 : vector<2x32xf32>
    %156 = arith.mulf %151, %154 : vector<2x32xf32>
    %157 = arith.addf %155, %156 : vector<2x32xf32>
    %158 = math.tanh %157 : vector<2x32xf32>
    %159 = arith.mulf %153, %158 : vector<2x32xf32>
    %c0_56 = arith.constant 0 : index
    %c5_57 = arith.constant 5 : index
    %c0_58 = arith.constant 0 : index
    %160 = vector.load %arg4[%c0_56, %c5_57, %c0_58] : memref<2x8x32xf32, #tpu.memory_space<vmem>>, vector<2x1x32xf32>
    %161 = vector.shape_cast %160 : vector<2x1x32xf32> to vector<2x32xf32>
    %162 = vector.shape_cast %159 : vector<2x32xf32> to vector<2x1x32xf32>
    tpu.vector_store %arg4[%c0_56, %c5_57, %c0_58], %162 {strides = array<i32>} : memref<2x8x32xf32, #tpu.memory_space<vmem>>, vector<2x1x32xf32>,
    %c0_59 = arith.constant 0 : index
    %c6 = arith.constant 6 : index
    %c0_60 = arith.constant 0 : index
    %163 = vector.load %arg3[%c0_59, %c6, %c0_60] : memref<2x8x128xf32, #tpu.memory_space<vmem>>, vector<2x1x128xf32>
    %164 = vector.shape_cast %163 : vector<2x1x128xf32> to vector<2x128xf32>
    %cst_61 = arith.constant dense<0.000000e+00> : vector<2x128xf32>
    %165 = tpu.matmul %159, %28, %cst_61 {dimension_numbers = #tpu.dot_dimension_numbers<[1], [0], [0], [1], [0, 0, 1, 1], [], []>} : vector<2x32xf32>, vector<32x128xf32>, vector<2x128xf32> -> vector<2x128xf32>
    %166 = arith.addf %164, %165 : vector<2x128xf32>
    %167 = arith.negf %166 : vector<2x128xf32>
    %168 = math.exp %167 : vector<2x128xf32>
    %cst_62 = arith.constant 1.000000e+00 : f32
    %169 = vector.broadcast %cst_62 : f32 to vector<2x128xf32>
    %170 = arith.addf %169, %168 : vector<2x128xf32>
    %171 = arith.divf %169, %170 : vector<2x128xf32>
    %172 = math.tanh %166 : vector<2x128xf32>
    %173 = vector.extract_strided_slice %171 {offsets = [0, 0], sizes = [2, 32], strides = [1, 1]} : vector<2x128xf32> to vector<2x32xf32>
    %174 = vector.extract_strided_slice %171 {offsets = [0, 32], sizes = [2, 32], strides = [1, 1]} : vector<2x128xf32> to vector<2x32xf32>
    %175 = vector.extract_strided_slice %171 {offsets = [0, 96], sizes = [2, 32], strides = [1, 1]} : vector<2x128xf32> to vector<2x32xf32>
    %176 = vector.extract_strided_slice %172 {offsets = [0, 64], sizes = [2, 32], strides = [1, 1]} : vector<2x128xf32> to vector<2x32xf32>
    %177 = arith.mulf %174, %157 : vector<2x32xf32>
    %178 = arith.mulf %173, %176 : vector<2x32xf32>
    %179 = arith.addf %177, %178 : vector<2x32xf32>
    %180 = math.tanh %179 : vector<2x32xf32>
    %181 = arith.mulf %175, %180 : vector<2x32xf32>
    %c0_63 = arith.constant 0 : index
    %c6_64 = arith.constant 6 : index
    %c0_65 = arith.constant 0 : index
    %182 = vector.load %arg4[%c0_63, %c6_64, %c0_65] : memref<2x8x32xf32, #tpu.memory_space<vmem>>, vector<2x1x32xf32>
    %183 = vector.shape_cast %182 : vector<2x1x32xf32> to vector<2x32xf32>
    %184 = vector.shape_cast %181 : vector<2x32xf32> to vector<2x1x32xf32>
    tpu.vector_store %arg4[%c0_63, %c6_64, %c0_65], %184 {strides = array<i32>} : memref<2x8x32xf32, #tpu.memory_space<vmem>>, vector<2x1x32xf32>,
    %c0_66 = arith.constant 0 : index
    %c7 = arith.constant 7 : index
    %c0_67 = arith.constant 0 : index
    %185 = vector.load %arg3[%c0_66, %c7, %c0_67] : memref<2x8x128xf32, #tpu.memory_space<vmem>>, vector<2x1x128xf32>
    %186 = vector.shape_cast %185 : vector<2x1x128xf32> to vector<2x128xf32>
    %cst_68 = arith.constant dense<0.000000e+00> : vector<2x128xf32>
    %187 = tpu.matmul %181, %28, %cst_68 {dimension_numbers = #tpu.dot_dimension_numbers<[1], [0], [0], [1], [0, 0, 1, 1], [], []>} : vector<2x32xf32>, vector<32x128xf32>, vector<2x128xf32> -> vector<2x128xf32>
    %188 = arith.addf %186, %187 : vector<2x128xf32>
    %189 = arith.negf %188 : vector<2x128xf32>
    %190 = math.exp %189 : vector<2x128xf32>
    %cst_69 = arith.constant 1.000000e+00 : f32
    %191 = vector.broadcast %cst_69 : f32 to vector<2x128xf32>
    %192 = arith.addf %191, %190 : vector<2x128xf32>
    %193 = arith.divf %191, %192 : vector<2x128xf32>
    %194 = math.tanh %188 : vector<2x128xf32>
    %195 = vector.extract_strided_slice %193 {offsets = [0, 0], sizes = [2, 32], strides = [1, 1]} : vector<2x128xf32> to vector<2x32xf32>
    %196 = vector.extract_strided_slice %193 {offsets = [0, 32], sizes = [2, 32], strides = [1, 1]} : vector<2x128xf32> to vector<2x32xf32>
    %197 = vector.extract_strided_slice %193 {offsets = [0, 96], sizes = [2, 32], strides = [1, 1]} : vector<2x128xf32> to vector<2x32xf32>
    %198 = vector.extract_strided_slice %194 {offsets = [0, 64], sizes = [2, 32], strides = [1, 1]} : vector<2x128xf32> to vector<2x32xf32>
    %199 = arith.mulf %196, %179 : vector<2x32xf32>
    %200 = arith.mulf %195, %198 : vector<2x32xf32>
    %201 = arith.addf %199, %200 : vector<2x32xf32>
    %202 = math.tanh %201 : vector<2x32xf32>
    %203 = arith.mulf %197, %202 : vector<2x32xf32>
    %c0_70 = arith.constant 0 : index
    %c7_71 = arith.constant 7 : index
    %c0_72 = arith.constant 0 : index
    %204 = vector.load %arg4[%c0_70, %c7_71, %c0_72] : memref<2x8x32xf32, #tpu.memory_space<vmem>>, vector<2x1x32xf32>
    %205 = vector.shape_cast %204 : vector<2x1x32xf32> to vector<2x32xf32>
    %206 = vector.shape_cast %203 : vector<2x32xf32> to vector<2x1x32xf32>
    tpu.vector_store %arg4[%c0_70, %c7_71, %c0_72], %206 {strides = array<i32>} : memref<2x8x32xf32, #tpu.memory_space<vmem>>, vector<2x1x32xf32>,
    %c0_73 = arith.constant 0 : index
    %c0_74 = arith.constant 0 : index
    %c0_75 = arith.constant 0 : index
    %207 = vector.load %arg4[%c0_73, %c0_74, %c0_75] : memref<2x8x32xf32, #tpu.memory_space<vmem>>, vector<2x8x32xf32>
    %208 = vector.shape_cast %207 : vector<2x8x32xf32> to vector<16x32xf32>
    %c136 = arith.constant 136 : index
    %c0_76 = arith.constant 0 : index
    %209 = vector.load %arg1[%c136, %c0_76] : memref<248x128xf32, #tpu.memory_space<vmem>>, vector<32x128xf32>
    %cst_77 = arith.constant dense<0.000000e+00> : vector<16x128xf32>
    %210 = tpu.matmul %208, %209, %cst_77 {dimension_numbers = #tpu.dot_dimension_numbers<[1], [0], [0], [1], [0, 0, 1, 1], [], []>} : vector<16x32xf32>, vector<32x128xf32>, vector<16x128xf32> -> vector<16x128xf32>
    %c168 = arith.constant 168 : index
    %c0_78 = arith.constant 0 : index
    %211 = vector.load %arg1[%c168, %c0_78] : memref<248x128xf32, #tpu.memory_space<vmem>>, vector<1x128xf32>
    %212 = vector.broadcast %211 : vector<1x128xf32> to vector<16x128xf32>
    %213 = arith.addf %210, %212 : vector<16x128xf32>
    %214 = vector.shape_cast %213 : vector<16x128xf32> to vector<2x8x128xf32>
    %c0_79 = arith.constant 0 : index
    %c0_80 = arith.constant 0 : index
    %c0_81 = arith.constant 0 : index
    %215 = vector.load %arg3[%c0_79, %c0_80, %c0_81] : memref<2x8x128xf32, #tpu.memory_space<vmem>>, vector<2x8x128xf32>
    tpu.vector_store %arg3[%c0_79, %c0_80, %c0_81], %214 {strides = array<i32>} : memref<2x8x128xf32, #tpu.memory_space<vmem>>, vector<2x8x128xf32>,
    %c176 = arith.constant 176 : index
    %c0_82 = arith.constant 0 : index
    %216 = vector.load %arg1[%c176, %c0_82] : memref<248x128xf32, #tpu.memory_space<vmem>>, vector<32x128xf32>
    %cst_83 = arith.constant 0.000000e+00 : f32
    %217 = vector.broadcast %cst_83 : f32 to vector<2x32xf32>
    %cst_84 = arith.constant 0.000000e+00 : f32
    %218 = vector.broadcast %cst_84 : f32 to vector<2x32xf32>
    %c0_85 = arith.constant 0 : index
    %c0_86 = arith.constant 0 : index
    %c0_87 = arith.constant 0 : index
    %219 = vector.load %arg3[%c0_85, %c0_86, %c0_87] : memref<2x8x128xf32, #tpu.memory_space<vmem>>, vector<2x1x128xf32>
    %220 = vector.shape_cast %219 : vector<2x1x128xf32> to vector<2x128xf32>
    %cst_88 = arith.constant dense<0.000000e+00> : vector<2x128xf32>
    %221 = tpu.matmul %217, %216, %cst_88 {dimension_numbers = #tpu.dot_dimension_numbers<[1], [0], [0], [1], [0, 0, 1, 1], [], []>} : vector<2x32xf32>, vector<32x128xf32>, vector<2x128xf32> -> vector<2x128xf32>
    %222 = arith.addf %220, %221 : vector<2x128xf32>
    %223 = arith.negf %222 : vector<2x128xf32>
    %224 = math.exp %223 : vector<2x128xf32>
    %cst_89 = arith.constant 1.000000e+00 : f32
    %225 = vector.broadcast %cst_89 : f32 to vector<2x128xf32>
    %226 = arith.addf %225, %224 : vector<2x128xf32>
    %227 = arith.divf %225, %226 : vector<2x128xf32>
    %228 = math.tanh %222 : vector<2x128xf32>
    %229 = vector.extract_strided_slice %227 {offsets = [0, 0], sizes = [2, 32], strides = [1, 1]} : vector<2x128xf32> to vector<2x32xf32>
    %230 = vector.extract_strided_slice %227 {offsets = [0, 32], sizes = [2, 32], strides = [1, 1]} : vector<2x128xf32> to vector<2x32xf32>
    %231 = vector.extract_strided_slice %227 {offsets = [0, 96], sizes = [2, 32], strides = [1, 1]} : vector<2x128xf32> to vector<2x32xf32>
    %232 = vector.extract_strided_slice %228 {offsets = [0, 64], sizes = [2, 32], strides = [1, 1]} : vector<2x128xf32> to vector<2x32xf32>
    %233 = arith.mulf %230, %218 : vector<2x32xf32>
    %234 = arith.mulf %229, %232 : vector<2x32xf32>
    %235 = arith.addf %233, %234 : vector<2x32xf32>
    %236 = math.tanh %235 : vector<2x32xf32>
    %237 = arith.mulf %231, %236 : vector<2x32xf32>
    %c0_90 = arith.constant 0 : index
    %c0_91 = arith.constant 0 : index
    %c0_92 = arith.constant 0 : index
    %238 = vector.load %arg4[%c0_90, %c0_91, %c0_92] : memref<2x8x32xf32, #tpu.memory_space<vmem>>, vector<2x1x32xf32>
    %239 = vector.shape_cast %238 : vector<2x1x32xf32> to vector<2x32xf32>
    %240 = vector.shape_cast %237 : vector<2x32xf32> to vector<2x1x32xf32>
    tpu.vector_store %arg4[%c0_90, %c0_91, %c0_92], %240 {strides = array<i32>} : memref<2x8x32xf32, #tpu.memory_space<vmem>>, vector<2x1x32xf32>,
    %c0_93 = arith.constant 0 : index
    %c1_94 = arith.constant 1 : index
    %c0_95 = arith.constant 0 : index
    %241 = vector.load %arg3[%c0_93, %c1_94, %c0_95] : memref<2x8x128xf32, #tpu.memory_space<vmem>>, vector<2x1x128xf32>
    %242 = vector.shape_cast %241 : vector<2x1x128xf32> to vector<2x128xf32>
    %cst_96 = arith.constant dense<0.000000e+00> : vector<2x128xf32>
    %243 = tpu.matmul %237, %216, %cst_96 {dimension_numbers = #tpu.dot_dimension_numbers<[1], [0], [0], [1], [0, 0, 1, 1], [], []>} : vector<2x32xf32>, vector<32x128xf32>, vector<2x128xf32> -> vector<2x128xf32>
    %244 = arith.addf %242, %243 : vector<2x128xf32>
    %245 = arith.negf %244 : vector<2x128xf32>
    %246 = math.exp %245 : vector<2x128xf32>
    %cst_97 = arith.constant 1.000000e+00 : f32
    %247 = vector.broadcast %cst_97 : f32 to vector<2x128xf32>
    %248 = arith.addf %247, %246 : vector<2x128xf32>
    %249 = arith.divf %247, %248 : vector<2x128xf32>
    %250 = math.tanh %244 : vector<2x128xf32>
    %251 = vector.extract_strided_slice %249 {offsets = [0, 0], sizes = [2, 32], strides = [1, 1]} : vector<2x128xf32> to vector<2x32xf32>
    %252 = vector.extract_strided_slice %249 {offsets = [0, 32], sizes = [2, 32], strides = [1, 1]} : vector<2x128xf32> to vector<2x32xf32>
    %253 = vector.extract_strided_slice %249 {offsets = [0, 96], sizes = [2, 32], strides = [1, 1]} : vector<2x128xf32> to vector<2x32xf32>
    %254 = vector.extract_strided_slice %250 {offsets = [0, 64], sizes = [2, 32], strides = [1, 1]} : vector<2x128xf32> to vector<2x32xf32>
    %255 = arith.mulf %252, %235 : vector<2x32xf32>
    %256 = arith.mulf %251, %254 : vector<2x32xf32>
    %257 = arith.addf %255, %256 : vector<2x32xf32>
    %258 = math.tanh %257 : vector<2x32xf32>
    %259 = arith.mulf %253, %258 : vector<2x32xf32>
    %c0_98 = arith.constant 0 : index
    %c1_99 = arith.constant 1 : index
    %c0_100 = arith.constant 0 : index
    %260 = vector.load %arg4[%c0_98, %c1_99, %c0_100] : memref<2x8x32xf32, #tpu.memory_space<vmem>>, vector<2x1x32xf32>
    %261 = vector.shape_cast %260 : vector<2x1x32xf32> to vector<2x32xf32>
    %262 = vector.shape_cast %259 : vector<2x32xf32> to vector<2x1x32xf32>
    tpu.vector_store %arg4[%c0_98, %c1_99, %c0_100], %262 {strides = array<i32>} : memref<2x8x32xf32, #tpu.memory_space<vmem>>, vector<2x1x32xf32>,
    %c0_101 = arith.constant 0 : index
    %c2_102 = arith.constant 2 : index
    %c0_103 = arith.constant 0 : index
    %263 = vector.load %arg3[%c0_101, %c2_102, %c0_103] : memref<2x8x128xf32, #tpu.memory_space<vmem>>, vector<2x1x128xf32>
    %264 = vector.shape_cast %263 : vector<2x1x128xf32> to vector<2x128xf32>
    %cst_104 = arith.constant dense<0.000000e+00> : vector<2x128xf32>
    %265 = tpu.matmul %259, %216, %cst_104 {dimension_numbers = #tpu.dot_dimension_numbers<[1], [0], [0], [1], [0, 0, 1, 1], [], []>} : vector<2x32xf32>, vector<32x128xf32>, vector<2x128xf32> -> vector<2x128xf32>
    %266 = arith.addf %264, %265 : vector<2x128xf32>
    %267 = arith.negf %266 : vector<2x128xf32>
    %268 = math.exp %267 : vector<2x128xf32>
    %cst_105 = arith.constant 1.000000e+00 : f32
    %269 = vector.broadcast %cst_105 : f32 to vector<2x128xf32>
    %270 = arith.addf %269, %268 : vector<2x128xf32>
    %271 = arith.divf %269, %270 : vector<2x128xf32>
    %272 = math.tanh %266 : vector<2x128xf32>
    %273 = vector.extract_strided_slice %271 {offsets = [0, 0], sizes = [2, 32], strides = [1, 1]} : vector<2x128xf32> to vector<2x32xf32>
    %274 = vector.extract_strided_slice %271 {offsets = [0, 32], sizes = [2, 32], strides = [1, 1]} : vector<2x128xf32> to vector<2x32xf32>
    %275 = vector.extract_strided_slice %271 {offsets = [0, 96], sizes = [2, 32], strides = [1, 1]} : vector<2x128xf32> to vector<2x32xf32>
    %276 = vector.extract_strided_slice %272 {offsets = [0, 64], sizes = [2, 32], strides = [1, 1]} : vector<2x128xf32> to vector<2x32xf32>
    %277 = arith.mulf %274, %257 : vector<2x32xf32>
    %278 = arith.mulf %273, %276 : vector<2x32xf32>
    %279 = arith.addf %277, %278 : vector<2x32xf32>
    %280 = math.tanh %279 : vector<2x32xf32>
    %281 = arith.mulf %275, %280 : vector<2x32xf32>
    %c0_106 = arith.constant 0 : index
    %c2_107 = arith.constant 2 : index
    %c0_108 = arith.constant 0 : index
    %282 = vector.load %arg4[%c0_106, %c2_107, %c0_108] : memref<2x8x32xf32, #tpu.memory_space<vmem>>, vector<2x1x32xf32>
    %283 = vector.shape_cast %282 : vector<2x1x32xf32> to vector<2x32xf32>
    %284 = vector.shape_cast %281 : vector<2x32xf32> to vector<2x1x32xf32>
    tpu.vector_store %arg4[%c0_106, %c2_107, %c0_108], %284 {strides = array<i32>} : memref<2x8x32xf32, #tpu.memory_space<vmem>>, vector<2x1x32xf32>,
    %c0_109 = arith.constant 0 : index
    %c3_110 = arith.constant 3 : index
    %c0_111 = arith.constant 0 : index
    %285 = vector.load %arg3[%c0_109, %c3_110, %c0_111] : memref<2x8x128xf32, #tpu.memory_space<vmem>>, vector<2x1x128xf32>
    %286 = vector.shape_cast %285 : vector<2x1x128xf32> to vector<2x128xf32>
    %cst_112 = arith.constant dense<0.000000e+00> : vector<2x128xf32>
    %287 = tpu.matmul %281, %216, %cst_112 {dimension_numbers = #tpu.dot_dimension_numbers<[1], [0], [0], [1], [0, 0, 1, 1], [], []>} : vector<2x32xf32>, vector<32x128xf32>, vector<2x128xf32> -> vector<2x128xf32>
    %288 = arith.addf %286, %287 : vector<2x128xf32>
    %289 = arith.negf %288 : vector<2x128xf32>
    %290 = math.exp %289 : vector<2x128xf32>
    %cst_113 = arith.constant 1.000000e+00 : f32
    %291 = vector.broadcast %cst_113 : f32 to vector<2x128xf32>
    %292 = arith.addf %291, %290 : vector<2x128xf32>
    %293 = arith.divf %291, %292 : vector<2x128xf32>
    %294 = math.tanh %288 : vector<2x128xf32>
    %295 = vector.extract_strided_slice %293 {offsets = [0, 0], sizes = [2, 32], strides = [1, 1]} : vector<2x128xf32> to vector<2x32xf32>
    %296 = vector.extract_strided_slice %293 {offsets = [0, 32], sizes = [2, 32], strides = [1, 1]} : vector<2x128xf32> to vector<2x32xf32>
    %297 = vector.extract_strided_slice %293 {offsets = [0, 96], sizes = [2, 32], strides = [1, 1]} : vector<2x128xf32> to vector<2x32xf32>
    %298 = vector.extract_strided_slice %294 {offsets = [0, 64], sizes = [2, 32], strides = [1, 1]} : vector<2x128xf32> to vector<2x32xf32>
    %299 = arith.mulf %296, %279 : vector<2x32xf32>
    %300 = arith.mulf %295, %298 : vector<2x32xf32>
    %301 = arith.addf %299, %300 : vector<2x32xf32>
    %302 = math.tanh %301 : vector<2x32xf32>
    %303 = arith.mulf %297, %302 : vector<2x32xf32>
    %c0_114 = arith.constant 0 : index
    %c3_115 = arith.constant 3 : index
    %c0_116 = arith.constant 0 : index
    %304 = vector.load %arg4[%c0_114, %c3_115, %c0_116] : memref<2x8x32xf32, #tpu.memory_space<vmem>>, vector<2x1x32xf32>
    %305 = vector.shape_cast %304 : vector<2x1x32xf32> to vector<2x32xf32>
    %306 = vector.shape_cast %303 : vector<2x32xf32> to vector<2x1x32xf32>
    tpu.vector_store %arg4[%c0_114, %c3_115, %c0_116], %306 {strides = array<i32>} : memref<2x8x32xf32, #tpu.memory_space<vmem>>, vector<2x1x32xf32>,
    %c0_117 = arith.constant 0 : index
    %c4_118 = arith.constant 4 : index
    %c0_119 = arith.constant 0 : index
    %307 = vector.load %arg3[%c0_117, %c4_118, %c0_119] : memref<2x8x128xf32, #tpu.memory_space<vmem>>, vector<2x1x128xf32>
    %308 = vector.shape_cast %307 : vector<2x1x128xf32> to vector<2x128xf32>
    %cst_120 = arith.constant dense<0.000000e+00> : vector<2x128xf32>
    %309 = tpu.matmul %303, %216, %cst_120 {dimension_numbers = #tpu.dot_dimension_numbers<[1], [0], [0], [1], [0, 0, 1, 1], [], []>} : vector<2x32xf32>, vector<32x128xf32>, vector<2x128xf32> -> vector<2x128xf32>
    %310 = arith.addf %308, %309 : vector<2x128xf32>
    %311 = arith.negf %310 : vector<2x128xf32>
    %312 = math.exp %311 : vector<2x128xf32>
    %cst_121 = arith.constant 1.000000e+00 : f32
    %313 = vector.broadcast %cst_121 : f32 to vector<2x128xf32>
    %314 = arith.addf %313, %312 : vector<2x128xf32>
    %315 = arith.divf %313, %314 : vector<2x128xf32>
    %316 = math.tanh %310 : vector<2x128xf32>
    %317 = vector.extract_strided_slice %315 {offsets = [0, 0], sizes = [2, 32], strides = [1, 1]} : vector<2x128xf32> to vector<2x32xf32>
    %318 = vector.extract_strided_slice %315 {offsets = [0, 32], sizes = [2, 32], strides = [1, 1]} : vector<2x128xf32> to vector<2x32xf32>
    %319 = vector.extract_strided_slice %315 {offsets = [0, 96], sizes = [2, 32], strides = [1, 1]} : vector<2x128xf32> to vector<2x32xf32>
    %320 = vector.extract_strided_slice %316 {offsets = [0, 64], sizes = [2, 32], strides = [1, 1]} : vector<2x128xf32> to vector<2x32xf32>
    %321 = arith.mulf %318, %301 : vector<2x32xf32>
    %322 = arith.mulf %317, %320 : vector<2x32xf32>
    %323 = arith.addf %321, %322 : vector<2x32xf32>
    %324 = math.tanh %323 : vector<2x32xf32>
    %325 = arith.mulf %319, %324 : vector<2x32xf32>
    %c0_122 = arith.constant 0 : index
    %c4_123 = arith.constant 4 : index
    %c0_124 = arith.constant 0 : index
    %326 = vector.load %arg4[%c0_122, %c4_123, %c0_124] : memref<2x8x32xf32, #tpu.memory_space<vmem>>, vector<2x1x32xf32>
    %327 = vector.shape_cast %326 : vector<2x1x32xf32> to vector<2x32xf32>
    %328 = vector.shape_cast %325 : vector<2x32xf32> to vector<2x1x32xf32>
    tpu.vector_store %arg4[%c0_122, %c4_123, %c0_124], %328 {strides = array<i32>} : memref<2x8x32xf32, #tpu.memory_space<vmem>>, vector<2x1x32xf32>,
    %c0_125 = arith.constant 0 : index
    %c5_126 = arith.constant 5 : index
    %c0_127 = arith.constant 0 : index
    %329 = vector.load %arg3[%c0_125, %c5_126, %c0_127] : memref<2x8x128xf32, #tpu.memory_space<vmem>>, vector<2x1x128xf32>
    %330 = vector.shape_cast %329 : vector<2x1x128xf32> to vector<2x128xf32>
    %cst_128 = arith.constant dense<0.000000e+00> : vector<2x128xf32>
    %331 = tpu.matmul %325, %216, %cst_128 {dimension_numbers = #tpu.dot_dimension_numbers<[1], [0], [0], [1], [0, 0, 1, 1], [], []>} : vector<2x32xf32>, vector<32x128xf32>, vector<2x128xf32> -> vector<2x128xf32>
    %332 = arith.addf %330, %331 : vector<2x128xf32>
    %333 = arith.negf %332 : vector<2x128xf32>
    %334 = math.exp %333 : vector<2x128xf32>
    %cst_129 = arith.constant 1.000000e+00 : f32
    %335 = vector.broadcast %cst_129 : f32 to vector<2x128xf32>
    %336 = arith.addf %335, %334 : vector<2x128xf32>
    %337 = arith.divf %335, %336 : vector<2x128xf32>
    %338 = math.tanh %332 : vector<2x128xf32>
    %339 = vector.extract_strided_slice %337 {offsets = [0, 0], sizes = [2, 32], strides = [1, 1]} : vector<2x128xf32> to vector<2x32xf32>
    %340 = vector.extract_strided_slice %337 {offsets = [0, 32], sizes = [2, 32], strides = [1, 1]} : vector<2x128xf32> to vector<2x32xf32>
    %341 = vector.extract_strided_slice %337 {offsets = [0, 96], sizes = [2, 32], strides = [1, 1]} : vector<2x128xf32> to vector<2x32xf32>
    %342 = vector.extract_strided_slice %338 {offsets = [0, 64], sizes = [2, 32], strides = [1, 1]} : vector<2x128xf32> to vector<2x32xf32>
    %343 = arith.mulf %340, %323 : vector<2x32xf32>
    %344 = arith.mulf %339, %342 : vector<2x32xf32>
    %345 = arith.addf %343, %344 : vector<2x32xf32>
    %346 = math.tanh %345 : vector<2x32xf32>
    %347 = arith.mulf %341, %346 : vector<2x32xf32>
    %c0_130 = arith.constant 0 : index
    %c5_131 = arith.constant 5 : index
    %c0_132 = arith.constant 0 : index
    %348 = vector.load %arg4[%c0_130, %c5_131, %c0_132] : memref<2x8x32xf32, #tpu.memory_space<vmem>>, vector<2x1x32xf32>
    %349 = vector.shape_cast %348 : vector<2x1x32xf32> to vector<2x32xf32>
    %350 = vector.shape_cast %347 : vector<2x32xf32> to vector<2x1x32xf32>
    tpu.vector_store %arg4[%c0_130, %c5_131, %c0_132], %350 {strides = array<i32>} : memref<2x8x32xf32, #tpu.memory_space<vmem>>, vector<2x1x32xf32>,
    %c0_133 = arith.constant 0 : index
    %c6_134 = arith.constant 6 : index
    %c0_135 = arith.constant 0 : index
    %351 = vector.load %arg3[%c0_133, %c6_134, %c0_135] : memref<2x8x128xf32, #tpu.memory_space<vmem>>, vector<2x1x128xf32>
    %352 = vector.shape_cast %351 : vector<2x1x128xf32> to vector<2x128xf32>
    %cst_136 = arith.constant dense<0.000000e+00> : vector<2x128xf32>
    %353 = tpu.matmul %347, %216, %cst_136 {dimension_numbers = #tpu.dot_dimension_numbers<[1], [0], [0], [1], [0, 0, 1, 1], [], []>} : vector<2x32xf32>, vector<32x128xf32>, vector<2x128xf32> -> vector<2x128xf32>
    %354 = arith.addf %352, %353 : vector<2x128xf32>
    %355 = arith.negf %354 : vector<2x128xf32>
    %356 = math.exp %355 : vector<2x128xf32>
    %cst_137 = arith.constant 1.000000e+00 : f32
    %357 = vector.broadcast %cst_137 : f32 to vector<2x128xf32>
    %358 = arith.addf %357, %356 : vector<2x128xf32>
    %359 = arith.divf %357, %358 : vector<2x128xf32>
    %360 = math.tanh %354 : vector<2x128xf32>
    %361 = vector.extract_strided_slice %359 {offsets = [0, 0], sizes = [2, 32], strides = [1, 1]} : vector<2x128xf32> to vector<2x32xf32>
    %362 = vector.extract_strided_slice %359 {offsets = [0, 32], sizes = [2, 32], strides = [1, 1]} : vector<2x128xf32> to vector<2x32xf32>
    %363 = vector.extract_strided_slice %359 {offsets = [0, 96], sizes = [2, 32], strides = [1, 1]} : vector<2x128xf32> to vector<2x32xf32>
    %364 = vector.extract_strided_slice %360 {offsets = [0, 64], sizes = [2, 32], strides = [1, 1]} : vector<2x128xf32> to vector<2x32xf32>
    %365 = arith.mulf %362, %345 : vector<2x32xf32>
    %366 = arith.mulf %361, %364 : vector<2x32xf32>
    %367 = arith.addf %365, %366 : vector<2x32xf32>
    %368 = math.tanh %367 : vector<2x32xf32>
    %369 = arith.mulf %363, %368 : vector<2x32xf32>
    %c0_138 = arith.constant 0 : index
    %c6_139 = arith.constant 6 : index
    %c0_140 = arith.constant 0 : index
    %370 = vector.load %arg4[%c0_138, %c6_139, %c0_140] : memref<2x8x32xf32, #tpu.memory_space<vmem>>, vector<2x1x32xf32>
    %371 = vector.shape_cast %370 : vector<2x1x32xf32> to vector<2x32xf32>
    %372 = vector.shape_cast %369 : vector<2x32xf32> to vector<2x1x32xf32>
    tpu.vector_store %arg4[%c0_138, %c6_139, %c0_140], %372 {strides = array<i32>} : memref<2x8x32xf32, #tpu.memory_space<vmem>>, vector<2x1x32xf32>,
    %c0_141 = arith.constant 0 : index
    %c7_142 = arith.constant 7 : index
    %c0_143 = arith.constant 0 : index
    %373 = vector.load %arg3[%c0_141, %c7_142, %c0_143] : memref<2x8x128xf32, #tpu.memory_space<vmem>>, vector<2x1x128xf32>
    %374 = vector.shape_cast %373 : vector<2x1x128xf32> to vector<2x128xf32>
    %cst_144 = arith.constant dense<0.000000e+00> : vector<2x128xf32>
    %375 = tpu.matmul %369, %216, %cst_144 {dimension_numbers = #tpu.dot_dimension_numbers<[1], [0], [0], [1], [0, 0, 1, 1], [], []>} : vector<2x32xf32>, vector<32x128xf32>, vector<2x128xf32> -> vector<2x128xf32>
    %376 = arith.addf %374, %375 : vector<2x128xf32>
    %377 = arith.negf %376 : vector<2x128xf32>
    %378 = math.exp %377 : vector<2x128xf32>
    %cst_145 = arith.constant 1.000000e+00 : f32
    %379 = vector.broadcast %cst_145 : f32 to vector<2x128xf32>
    %380 = arith.addf %379, %378 : vector<2x128xf32>
    %381 = arith.divf %379, %380 : vector<2x128xf32>
    %382 = math.tanh %376 : vector<2x128xf32>
    %383 = vector.extract_strided_slice %381 {offsets = [0, 0], sizes = [2, 32], strides = [1, 1]} : vector<2x128xf32> to vector<2x32xf32>
    %384 = vector.extract_strided_slice %381 {offsets = [0, 32], sizes = [2, 32], strides = [1, 1]} : vector<2x128xf32> to vector<2x32xf32>
    %385 = vector.extract_strided_slice %381 {offsets = [0, 96], sizes = [2, 32], strides = [1, 1]} : vector<2x128xf32> to vector<2x32xf32>
    %386 = vector.extract_strided_slice %382 {offsets = [0, 64], sizes = [2, 32], strides = [1, 1]} : vector<2x128xf32> to vector<2x32xf32>
    %387 = arith.mulf %384, %367 : vector<2x32xf32>
    %388 = arith.mulf %383, %386 : vector<2x32xf32>
    %389 = arith.addf %387, %388 : vector<2x32xf32>
    %390 = math.tanh %389 : vector<2x32xf32>
    %391 = arith.mulf %385, %390 : vector<2x32xf32>
    %c0_146 = arith.constant 0 : index
    %c7_147 = arith.constant 7 : index
    %c0_148 = arith.constant 0 : index
    %392 = vector.load %arg4[%c0_146, %c7_147, %c0_148] : memref<2x8x32xf32, #tpu.memory_space<vmem>>, vector<2x1x32xf32>
    %393 = vector.shape_cast %392 : vector<2x1x32xf32> to vector<2x32xf32>
    %394 = vector.shape_cast %391 : vector<2x32xf32> to vector<2x1x32xf32>
    tpu.vector_store %arg4[%c0_146, %c7_147, %c0_148], %394 {strides = array<i32>} : memref<2x8x32xf32, #tpu.memory_space<vmem>>, vector<2x1x32xf32>,
    %c0_149 = arith.constant 0 : index
    %c0_150 = arith.constant 0 : index
    %c0_151 = arith.constant 0 : index
    %395 = vector.load %arg4[%c0_149, %c0_150, %c0_151] : memref<2x8x32xf32, #tpu.memory_space<vmem>>, vector<2x8x32xf32>
    %396 = vector.shape_cast %395 : vector<2x8x32xf32> to vector<16x32xf32>
    %cst_152 = arith.constant 0.000000e+00 : f32
    %397 = vector.broadcast %cst_152 : f32 to vector<16x32xf32>
    %398 = arith.maximumf %396, %397 : vector<16x32xf32>
    %c208 = arith.constant 208 : index
    %c0_153 = arith.constant 0 : index
    %399 = vector.load %arg1[%c208, %c0_153] : memref<248x128xf32, #tpu.memory_space<vmem>>, vector<32x128xf32>
    %cst_154 = arith.constant dense<0.000000e+00> : vector<16x128xf32>
    %400 = tpu.matmul %398, %399, %cst_154 {dimension_numbers = #tpu.dot_dimension_numbers<[1], [0], [0], [1], [0, 0, 1, 1], [], []>} : vector<16x32xf32>, vector<32x128xf32>, vector<16x128xf32> -> vector<16x128xf32>
    %c240 = arith.constant 240 : index
    %c0_155 = arith.constant 0 : index
    %401 = vector.load %arg1[%c240, %c0_155] : memref<248x128xf32, #tpu.memory_space<vmem>>, vector<1x128xf32>
    %402 = vector.broadcast %401 : vector<1x128xf32> to vector<16x128xf32>
    %403 = arith.addf %400, %402 : vector<16x128xf32>
    %c0_156 = arith.constant 0 : index
    %c0_157 = arith.constant 0 : index
    %404 = vector.load %arg2[%c0_156, %c0_157] : memref<16x128xf32, #tpu.memory_space<vmem>>, vector<16x128xf32>
    tpu.vector_store %arg2[%c0_156, %c0_157], %403 {strides = array<i32>} : memref<16x128xf32, #tpu.memory_space<vmem>>, vector<16x128xf32>,
    return
  }
}

</mosaic_0001>

<bundles_post_ra>
// kernel: seq_em_lstm_forward_impl.1
= control target key start
LH: loop header
LB: loop body
LE: loop exit
PB: predicated region body
PF: predicated region fallthrough
CT: control target
= control target key end

     0   :  { %7 = vsyncpa [#allocation5], 0  ;;  %s3960_s0 = inlined_call_operand.hbm [shape: f32[2,8,24], index: 0, kind: input, shape index: {}]   ;;  %s3961_s1 = inlined_call_operand.hbm [shape: f32[248,128], index: 1, kind: input, shape index: {}]   ;;  %s3962_s2 = inlined_call_operand.vmem [shape: f32[16,128], index: 2, kind: output, shape index: {}]  }
   0x1   :  { %8 = vsyncpa [#allocation7], 0  ;;  %s3433_s9 = smov [#allocation4]  }
   0x2   :  { %s14_s10 = sshll.u32 %s3433_s9, 4  ;;  %s15_s10 = int_to_ptr.vmem [resolvable:$true] %s14_s10 }
   0x3   :  { %s3397_s11 = scalar_lea.vmem %s15_s10, 256  ;;  %p3402_p1 = scmp.lt.s32.totalorder %s15_s10, %s15_s10 }
   0x4   :  { %p3398_p0 = scmp.ne.s32.totalorder %s15_s10, %s3397_s11  ;;  %p3403_p2 = scmp.lt.s32.totalorder %s3397_s11, %s3397_s11 }
   0x6   :  { %p3404_p3 = por %p3403_p2, %p3402_p1 }
   0x8   :  { %p3405_p4 = pnand %p3404_p3, %p3398_p0 }
   0xa   :  { %3408 = shalt.err (!%p3405_p4)
}
   0xb   :  { %s3434_s12 = smov 128   ;;  %s3435_s13 = smov 8  }
   0xc   :  { %20 = dma.hbm_to_vmem [thread:$0]  %s3960_s0, 256, %s15_s10, [#allocation5], %s3434_s12, %s3434_s12, %s3435_s13  }
   0xd   :  { %s3436_s16 = smov [#allocation6]  }
   0xe   :  { %s26_s17 = sshll.u32 %s3436_s16, 4  ;;  %s27_s17 = int_to_ptr.vmem [resolvable:$true] %s26_s17 }
   0xf   :  { %s3417_s18 = scalar_lea.vmem %s27_s17, 3968  ;;  %p3422_p6 = scmp.lt.s32.totalorder %s27_s17, %s27_s17 }
  0x10   :  { %p3418_p5 = scmp.ne.s32.totalorder %s27_s17, %s3417_s18  ;;  %p3423_p7 = scmp.lt.s32.totalorder %s3417_s18, %s3417_s18 }
  0x12   :  { %p3424_p8 = por %p3423_p7, %p3422_p6 }
  0x14   :  { %p3425_p9 = pnand %p3424_p8, %p3418_p5 }
  0x16   :  { %3428 = shalt.err (!%p3425_p9)
}
  0x17   :  { %32 = dma.hbm_to_vmem [thread:$0]  %s3961_s1, 3968, %s27_s17, [#allocation7], %s3434_s12, %s3434_s12, %s3435_s13  }
  0x18   :  { %3429 = dma.done.wait [#allocation5], 256  }
  0x19   :  { %3430 = vsyncadd [#allocation5], 4294967040 }
  0x1a   :  { %3431 = dma.done.wait [#allocation7], 3968  }
  0x1b   :  { %3432 = vsyncadd [#allocation7], 4294963328  ;;  %v3437_v0 = vmov 1   ;;  %v2724_v1 = vld [vmem:[#allocation6] ss:$0 sm:$0xff]  ;;  %s3438_s0 = smov 1   ;;  %v56_v29 = vlaneseq }
  0x1c   :  { %3132 = vset.pattern.permute.xlu1 %v3437_v0  ;;  %3131 = vset.pattern.permute.xlu0 %v3437_v0  ;;  %v77_v2 = vld [vmem:[#allocation6 + $0x40] sm:$0xff]  ;;  %v76_v3 = vld [vmem:[#allocation6 + $0x38] sm:$0xff]  ;;  %v75_v5 = vld [vmem:[#allocation6 + $0x30] sm:$0xff]  ;;  %v3439_v11 = vmov 0.0   ;;  %vm81_vm0 = vcmask 195584   ;;  %vm3440_vm1 = vmmov 0  }
  0x1d   :  { %47 = vrot.lane.b32.xlu0 %v2724_v1, %s3438_s0  ;;  %2900 = vmatprep.subr.mxu1 %v77_v2  ;;  %v80_v4 = vld [vmem:[#allocation6 + $0x58] sm:$0xff]  ;;  %v79_v6 = vld [vmem:[#allocation6 + $0x50] sm:$0xff]  ;;  %v78_v7 = vld [vmem:[#allocation6 + $0x48] sm:$0xff]  ;;  %v57_v30 = vand.u32 127, %v56_v29  ;;  %vm163_vm2 = vcmask 523264   ;;  %s3441_s1 = smov 64  }
  0x1e   :  { %2901 = vmatpush3.msra.mxu1 %v77_v2  ;;  %2891 = vmatprep.subr.mxu0 %v80_v4  ;;  %v74_v8 = vld [vmem:[#allocation6 + $0x28] sm:$0xff]  ;;  %v73_v9 = vld [vmem:[#allocation6 + $0x20] sm:$0xff]  ;;  %v72_v10 = vld [vmem:[#allocation6 + $0x18] sm:$0xff]  ;;  %s3442_s21 = smov 32   ;;  %vm402_vm5 = vcmask 1041409   ;;  %vm260_vm6 = vcmask 261120  }
  0x1f   :  { %2902 = vmatprep.subr.mxu1 %v76_v3  ;;  %2892 = vmatpush3.msra.mxu0 %v80_v4  ;;  %v71_v12 = vld [vmem:[#allocation6 + $0x10] sm:$0xff]  ;;  %v40_v14 = vld [vmem:[#allocation4 + $0x8] sm:$0xff]  ;;  %v70_v22 = vld [vmem:[#allocation6 + $0x8] sm:$0xff]  ;;  %vm396_vm7 = vcmask 253952  }
  0x20   :  { %2903 = vmatpush3.msra.mxu1 %v76_v3  ;;  %2893 = vmatprep.subr.mxu0 %v79_v6  ;;  %v39_v13 = vld [vmem:[#allocation4] sm:$0xff]  ;;  %v3465_v25 = vld [vmem:[#allocation6 + $0x80] sm:$0xff]  ;;  %v3468_v26 = vld [vmem:[#allocation6 + $0x78] sm:$0xff] }
  0x21   :  { %2904 = vmatprep.subr.mxu1 %v75_v5  ;;  %2894 = vmatpush3.msra.mxu0 %v79_v6  ;;  %v3474_v27 = vld [vmem:[#allocation6 + $0x70] sm:$0xff]  ;;  %v3478_v28 = vld [vmem:[#allocation6 + $0x68] sm:$0xff]  ;;  %v2731_v40 = vld [vmem:[#allocation6 + $0x60] ss:$0 sm:$0xff] }
  0x22   :  { %2905 = vmatpush3.msra.mxu1 %v75_v5  ;;  %2895 = vmatprep.subr.mxu0 %v78_v7 }
  0x23   :  { %2906 = vmatprep.subr.mxu1 %v74_v8  ;;  %2896 = vmatpush3.msra.mxu0 %v78_v7 }
  0x24   :  { %2907 = vmatpush3.msra.mxu1 %v74_v8  ;;  %2919 = vmatprep.subr.mxu0 %v3439_v11 }
  0x25   :  { %2908 = vmatprep.subr.mxu1 %v73_v9  ;;  %2897 = vmatprep.mubr.msk.f32.mxu0 %vm81_vm0, %v39_v13 }
  0x26   :  { %2909 = vmatpush3.msra.mxu1 %v73_v9  ;;  %2898 = vmatmul.mubr.msk.f32.vlgmr.msra.gmra.mxu0 %vm81_vm0, %v40_v14 }
  0x27   :  { %2910 = vmatprep.subr.mxu1 %v72_v10  ;;  %2920 = vmatpush3.msra.mxu0 %v3465_v25 }
  0x28   :  { %2911 = vmatpush3.msra.mxu1 %v72_v10  ;;  %2927 = vmatprep.mubr.msk.f32.mxu0 %vm3440_vm1, %v3439_v11 }
  0x29   :  { %2912 = vmatprep.subr.mxu1 %v71_v12  ;;  %2921 = vmatprep.subr.mxu0 %v3439_v11 }
  0x2a   :  { %2913 = vmatpush3.msra.mxu1 %v71_v12  ;;  %2922 = vmatpush3.msra.mxu0 %v3468_v26 }
  0x2b   :  { %2914 = vmatprep.subr.mxu1 %v70_v22  ;;  %2923 = vmatprep.subr.mxu0 %v3439_v11 }
  0x2c   :  { %2915 = vmatpush3.msra.mxu1 %v70_v22  ;;  %2924 = vmatpush3.msra.mxu0 %v3474_v27 }
  0x2d   :  { %2941 = vmatprep.subr.mxu1 %v3439_v11  ;;  %2925 = vmatprep.subr.mxu0 %v3439_v11 }
  0x2e   :  { %2926 = vmatpush3.msra.mxu0 %v3478_v28 }
  0x2f   :  { %2928 = vmatmul.mubr.f32.vlgmr.msra.gmra.mxu0 %v3439_v11  ;;  %2930 = vmatprep.subr.mxu0 %v3439_v11 }
  0x30   :  { %2931 = vmatpush3.msra.mxu0 %v3465_v25  ;;  %2938 = vmatprep.mubr.msk.f32.mxu0 %vm3440_vm1, %v3439_v11 }
  0x31   :  { %2932 = vmatprep.subr.mxu0 %v3439_v11 }
  0x32   :  { %2933 = vmatpush3.msra.mxu0 %v3468_v26 }
  0x33   :  { %2934 = vmatprep.subr.mxu0 %v3439_v11 }
  0x34   :  { %2935 = vmatpush3.msra.mxu0 %v3474_v27 }
  0x35   :  { %2936 = vmatprep.subr.mxu0 %v3439_v11 }
  0x36   :  { %2937 = vmatpush3.msra.mxu0 %v3478_v28 }
  0x37   :  { %2952 = vmatprep.subr.mxu0 %v3439_v11 }
  0x8f   :  { %v48_v15 = vpop.permute.xlu0 %47 }
  0x90   :  { %v50_v16 = vmul.f32 %v48_v15, %v39_v13  ;;  %v51_v17 = vmul.f32 %v48_v15, %v40_v14 }
  0x92   :  { %v53_v18 = vadd.f32 %v2724_v1, %v51_v17  ;;  %v52_v19 = vadd.f32 %v2724_v1, %v50_v16 }
  0x94   :  { %v3119_v20 = vtrunc.f32 %v53_v18  ;;  %v3117_v21 = vtrunc.f32 %v52_v19 }
  0x96   :  { %v3120_v23 = vcvt.f32.s32 %v3119_v20  ;;  %v3118_v24 = vcvt.f32.s32 %v3117_v21 }
  0x98   :  { %62 = vperm.xlu1 %3132, %v3120_v23   ;;  %59 = vperm.xlu0 %3131, %v3118_v24  }
  0xe6   :  { %v2899_v35 = vpop.f32.mrf.mxu0 }
  0xe8   :  { %v154_v36 = vpop.f32.mrf.mxu0 }
  0xef   :  { %v330_v37 = vpop.f32.mrf.mxu0 }
  0xf0   :  { %v335_v46 = vrot.slane %v330_v37, 1 }
  0xf1   :  { %v2929_v38 = vpop.f32.mrf.mxu0 }
 0x113   :  { %v63_v31 = vpop.permute.xlu1 %62  ;;  %v60_v32 = vpop.permute.xlu0 %59 }
 0x114   :  { %vm65_vm3 = vcmp.eq.s32.totalorder %v57_v30, %v63_v31  ;;  %vm64_vm4 = vcmp.eq.s32.totalorder %v57_v30, %v60_v32 }
 0x115   :  { %v2726_v33 = vsel %vm65_vm3, 1.0, %v3439_v11  ;;  %v2725_v34 = vsel %vm64_vm4, 1.0, %v3439_v11 }
 0x116   :  { %2916 = vmatprep.mubr.msk.f32.mxu1 %vm163_vm2, %v2725_v34 }
 0x117   :  { %2917 = vmatmul.mubr.msk.f32.vlgmr.msra.gmra.mxu1 %vm163_vm2, %v2726_v33 }
 0x118   :  { %2942 = vmatpush3.msra.mxu1 %v3465_v25  ;;  %2949 = vmatprep.mubr.msk.f32.mxu1 %vm3440_vm1, %v3439_v11 }
 0x119   :  { %2943 = vmatprep.subr.mxu1 %v3439_v11 }
 0x11a   :  { %2944 = vmatpush3.msra.mxu1 %v3468_v26 }
 0x11b   :  { %2945 = vmatprep.subr.mxu1 %v3439_v11 }
 0x11c   :  { %2946 = vmatpush3.msra.mxu1 %v3474_v27 }
 0x11d   :  { %2947 = vmatprep.subr.mxu1 %v3439_v11 }
 0x11e   :  { %2948 = vmatpush3.msra.mxu1 %v3478_v28 }
 0x11f   :  { %2963 = vmatprep.subr.mxu1 %v3439_v11 }
 0x1d7   :  { %v2918_v39 = vpop.f32.mrf.mxu1 }
 0x1d8   :  { %v242_v41 = vadd.f32 %v2918_v39, %v2899_v35 }
 0x1d9   :  { %v236_v42 = vpop.f32.mrf.mxu1 }
 0x1da   :  { %v251_v43 = vadd.f32 %v2731_v40, %v242_v41  ;;  %v237_v44 = vadd.f32 %v236_v42, %v154_v36 }
 0x1dc   :  { %253 = vst [vmem:[#allocation2 + $0x8] sm:$0xff] %v251_v43  ;;  %v250_v45 = vadd.f32 %v2731_v40, %v237_v44 }
 0x1de   :  { %252 = vst [vmem:[#allocation2] sm:$0xff] %v250_v45 }
 0x1e3   :  { %v259_v47 = vld [vmem:[#allocation2 + $0x8] sm:$0x1]  ;;  %v400_v21 = vld [vmem:[#allocation2 + $0x9] sm:$0x1] }
 0x1e4   :  { %v339_v48 = vadd.f32 %v335_v46, %v259_v47 }
 0x1e5   :  { %v258_v49 = vld [vmem:[#allocation2] sm:$0x1]  ;;  %v399_v17 = vld [vmem:[#allocation2 + $0x1] sm:$0x1] }
 0x1e6   :  { %v338_v50 = vadd.f32 %v330_v37, %v258_v49  ;;  %3133 = vtanh.f32 %v339_v48  ;;  %v2733_v53 = vmul.f32 -1.442695, %v339_v48 }
 0x1e8   :  { %3135 = vtanh.f32 %v338_v50  ;;  %v2732_v54 = vmul.f32 -1.442695, %v338_v50 }
 0x1e9   :  { %3137 = vpow2.f32 %v2733_v53 }
 0x1ea   :  { %3139 = vpow2.f32 %v2732_v54 }
 0x1f3   :  { %v3134_v51 = vpop.eup %3133 }
 0x1f4   :  { %360 = vrot.lane.b32.xlu1 %v3134_v51, %s3441_s1 }
 0x1f5   :  { %v3136_v52 = vpop.eup %3135 }
 0x1f6   :  { %v3138_v55 = vpop.eup %3137 }
 0x1f7   :  { %v347_v56 = vadd.f32 1.0, %v3138_v55  ;;  %v3140_v57 = vpop.eup %3139 }
 0x1f8   :  { %358 = vrot.lane.b32.xlu1 %v3136_v52, %s3441_s1  ;;  %v346_v58 = vadd.f32 1.0, %v3140_v57  ;;  %v542_v57 = vld [vmem:[#allocation2 + $0x2] sm:$0x1] }
 0x1f9   :  { %3141 = vrcp.f32 %v347_v56 }
 0x1fa   :  { %3143 = vrcp.f32 %v346_v58 }
 0x206   :  { %v3142_v59 = vpop.eup %3141 }
 0x207   :  { %v3144_v62 = vpop.eup %3143  ;;  %v355_v1 = vmul.f32 0.0, %v3142_v59 }
 0x208   :  { %v354_v4 = vmul.f32 0.0, %v3144_v62 }
 0x266   :  { %v361_v60 = vpop.permute.xlu1 %360 }
 0x267   :  { %v365_v61 = vmul.f32 %v3142_v59, %v361_v60 }
 0x269   :  { %370 = vrot.lane.b32.xlu0 %v365_v61, %s3442_s21  ;;  %v543_v61 = vld [vmem:[#allocation2 + $0xa] sm:$0x1] }
 0x26a   :  { %v359_v63 = vpop.permute.xlu1 %358 }
 0x26b   :  { %v364_v0 = vmul.f32 %v3144_v62, %v359_v63 }
 0x26d   :  { %368 = vrot.lane.b32.xlu1 %v364_v0, %s3442_s21 }
 0x2db   :  { %v371_v2 = vpop.permute.xlu0 %370 }
 0x2dc   :  { %v3511_v3 = vadd.f32 %v371_v2, %v355_v1 }
 0x2de   :  { %3145 = vtanh.f32 %v3511_v3 }
 0x2df   :  { %v369_v5 = vpop.permute.xlu1 %368 }
 0x2e0   :  { %v374_v6 = vadd.f32 %v369_v5, %v354_v4 }
 0x2e2   :  { %3147 = vtanh.f32 %v374_v6 }
 0x2eb   :  { %v3146_v7 = vpop.eup %3145 }
 0x2ec   :  { %382 = vrot.lane.b32.xlu0 %v3146_v7, %s3441_s1 }
 0x2ef   :  { %v3148_v8 = vpop.eup %3147 }
 0x2f0   :  { %380 = vrot.lane.b32.xlu1 %v3148_v8, %s3441_s1 }
 0x35e   :  { %v383_v9 = vpop.permute.xlu0 %382 }
 0x35f   :  { %v3516_v10 = vmul.f32 %v3142_v59, %v383_v9 }
 0x361   :  { %v401_v13 = vrot.slane %v3516_v10, 7 }
 0x362   :  { %v381_v12 = vpop.permute.xlu1 %380 }
 0x363   :  { %v3519_v14 = vmul.f32 %v3144_v62, %v381_v12 }
 0x365   :  { %v403_v15 = vsel %vm402_vm5, %v401_v13, %v3519_v14 }
 0x366   :  { %404 = vrot.lane.b32.xlu0 %v403_v15, %s3442_s21 }
 0x3d8   :  { %v405_v16 = vpop.permute.xlu0 %404 }
 0x3d9   :  { %2939 = vmatmul.mubr.msk.f32.vlgmr.msra.gmra.mxu0 %vm260_vm6, %v405_v16 }
 0x3da   :  { %2953 = vmatpush3.msra.mxu0 %v3465_v25  ;;  %2960 = vmatprep.mubr.msk.f32.mxu0 %vm3440_vm1, %v3439_v11 }
 0x3db   :  { %2954 = vmatprep.subr.mxu0 %v3439_v11 }
 0x3dc   :  { %2955 = vmatpush3.msra.mxu0 %v3468_v26 }
 0x3dd   :  { %2956 = vmatprep.subr.mxu0 %v3439_v11 }
 0x3de   :  { %2957 = vmatpush3.msra.mxu0 %v3474_v27 }
 0x3df   :  { %2958 = vmatprep.subr.mxu0 %v3439_v11 }
 0x3e0   :  { %2959 = vmatpush3.msra.mxu0 %v3478_v28 }
 0x3e1   :  { %2974 = vmatprep.subr.mxu0 %v3439_v11 }
 0x499   :  { %v474_v18 = vpop.f32.mrf.mxu0 }
 0x49a   :  { %v479_v19 = vrot.slane %v474_v18, 1  ;;  %v482_v20 = vadd.f32 %v474_v18, %v399_v17 }
 0x49b   :  { %v2940_v22 = vpop.f32.mrf.mxu0 }
 0x49c   :  { %v483_v23 = vadd.f32 %v479_v19, %v400_v21  ;;  %3149 = vtanh.f32 %v482_v20  ;;  %v2735_v30 = vmul.f32 -1.442695, %v482_v20 }
 0x49e   :  { %3151 = vtanh.f32 %v483_v23  ;;  %v2736_v31 = vmul.f32 -1.442695, %v483_v23 }
 0x49f   :  { %3153 = vpow2.f32 %v2735_v30 }
 0x4a0   :  { %3155 = vpow2.f32 %v2736_v31 }
 0x4a9   :  { %v3150_v24 = vpop.eup %3149 }
 0x4aa   :  { %502 = vrot.lane.b32.xlu0 %v3150_v24, %s3441_s1 }
 0x4ab   :  { %v3152_v29 = vpop.eup %3151 }
 0x4ac   :  { %504 = vrot.lane.b32.xlu1 %v3152_v29, %s3441_s1  ;;  %v3154_v32 = vpop.eup %3153 }
 0x4ad   :  { %v3156_v33 = vpop.eup %3155  ;;  %v490_v34 = vadd.f32 1.0, %v3154_v32 }
 0x4ae   :  { %v491_v35 = vadd.f32 1.0, %v3156_v33 }
 0x4af   :  { %3157 = vrcp.f32 %v490_v34 }
 0x4b0   :  { %3159 = vrcp.f32 %v491_v35 }
 0x4bc   :  { %v3158_v36 = vpop.eup %3157 }
 0x4bd   :  { %v3160_v39 = vpop.eup %3159  ;;  %v498_v42 = vmul.f32 %v3158_v36, %v374_v6 }
 0x4be   :  { %v499_v45 = vmul.f32 %v3160_v39, %v3511_v3 }
 0x51c   :  { %v503_v37 = vpop.permute.xlu0 %502 }
 0x51d   :  { %v508_v38 = vmul.f32 %v3158_v36, %v503_v37 }
 0x51e   :  { %v505_v40 = vpop.permute.xlu1 %504 }
 0x51f   :  { %512 = vrot.lane.b32.xlu0 %v508_v38, %s3442_s21  ;;  %v509_v41 = vmul.f32 %v3160_v39, %v505_v40  ;;  %v685_v40 = vld [vmem:[#allocation2 + $0xb] sm:$0x1] }
 0x521   :  { %514 = vrot.lane.b32.xlu1 %v509_v41, %s3442_s21 }
 0x591   :  { %v513_v43 = vpop.permute.xlu0 %512 }
 0x592   :  { %v518_v44 = vadd.f32 %v513_v43, %v498_v42 }
 0x593   :  { %v515_v46 = vpop.permute.xlu1 %514 }
 0x594   :  { %3161 = vtanh.f32 %v518_v44  ;;  %v519_v47 = vadd.f32 %v515_v46, %v499_v45 }
 0x596   :  { %3163 = vtanh.f32 %v519_v47 }
 0x5a1   :  { %v3162_v48 = vpop.eup %3161 }
 0x5a2   :  { %524 = vrot.lane.b32.xlu0 %v3162_v48, %s3441_s1 }
 0x5a3   :  { %v3164_v49 = vpop.eup %3163 }
 0x5a4   :  { %526 = vrot.lane.b32.xlu1 %v3164_v49, %s3441_s1 }
 0x614   :  { %v525_v50 = vpop.permute.xlu0 %524 }
 0x615   :  { %v3544_v53 = vmul.f32 %v3158_v36, %v525_v50  ;;  %v684_v36 = vld [vmem:[#allocation2 + $0x3] sm:$0x1] }
 0x616   :  { %v527_v51 = vpop.permute.xlu1 %526 }
 0x617   :  { %v3542_v52 = vmul.f32 %v3160_v39, %v527_v51 }
 0x619   :  { %v544_v54 = vrot.slane %v3542_v52, 7 }
 0x61b   :  { %v545_v55 = vsel %vm402_vm5, %v544_v54, %v3544_v53 }
 0x61c   :  { %546 = vrot.lane.b32.xlu1 %v545_v55, %s3442_s21 }
 0x68e   :  { %v547_v56 = vpop.permute.xlu1 %546 }
 0x68f   :  { %2950 = vmatmul.mubr.msk.f32.vlgmr.msra.gmra.mxu1 %vm260_vm6, %v547_v56 }
 0x690   :  { %2964 = vmatpush3.msra.mxu1 %v3465_v25  ;;  %2971 = vmatprep.mubr.msk.f32.mxu1 %vm3440_vm1, %v3439_v11 }
 0x691   :  { %2965 = vmatprep.subr.mxu1 %v3439_v11 }
 0x692   :  { %2966 = vmatpush3.msra.mxu1 %v3468_v26 }
 0x693   :  { %2967 = vmatprep.subr.mxu1 %v3439_v11 }
 0x694   :  { %2968 = vmatpush3.msra.mxu1 %v3474_v27 }
 0x695   :  { %2969 = vmatprep.subr.mxu1 %v3439_v11 }
 0x696   :  { %2970 = vmatpush3.msra.mxu1 %v3478_v28 }
 0x697   :  { %2985 = vmatprep.subr.mxu1 %v3439_v11 }
 0x74f   :  { %v616_v58 = vpop.f32.mrf.mxu1 }
 0x750   :  { %v621_v59 = vrot.slane %v616_v58, 1  ;;  %v624_v60 = vadd.f32 %v616_v58, %v542_v57 }
 0x751   :  { %v2951_v62 = vpop.f32.mrf.mxu1 }
 0x752   :  { %v625_v63 = vadd.f32 %v621_v59, %v543_v61  ;;  %3165 = vtanh.f32 %v624_v60  ;;  %v2738_v2 = vmul.f32 -1.442695, %v624_v60 }
 0x754   :  { %3167 = vtanh.f32 %v625_v63  ;;  %v2739_v3 = vmul.f32 -1.442695, %v625_v63 }
 0x755   :  { %3169 = vpow2.f32 %v2738_v2 }
 0x756   :  { %3171 = vpow2.f32 %v2739_v3 }
 0x75f   :  { %v3166_v0 = vpop.eup %3165 }
 0x760   :  { %644 = vrot.lane.b32.xlu1 %v3166_v0, %s3441_s1 }
 0x761   :  { %v3168_v1 = vpop.eup %3167 }
 0x762   :  { %646 = vrot.lane.b32.xlu0 %v3168_v1, %s3441_s1  ;;  %v3170_v4 = vpop.eup %3169 }
 0x763   :  { %v3172_v5 = vpop.eup %3171  ;;  %v632_v6 = vadd.f32 1.0, %v3170_v4 }
 0x764   :  { %v633_v7 = vadd.f32 1.0, %v3172_v5 }
 0x765   :  { %3173 = vrcp.f32 %v632_v6 }
 0x766   :  { %3175 = vrcp.f32 %v633_v7 }
 0x772   :  { %v3174_v8 = vpop.eup %3173 }
 0x773   :  { %v3176_v13 = vpop.eup %3175  ;;  %v640_v17 = vmul.f32 %v3174_v8, %v518_v44 }
 0x774   :  { %v641_v20 = vmul.f32 %v3176_v13, %v519_v47 }
 0x7d2   :  { %v645_v9 = vpop.permute.xlu1 %644 }
 0x7d3   :  { %v650_v12 = vmul.f32 %v3174_v8, %v645_v9 }
 0x7d4   :  { %v647_v15 = vpop.permute.xlu0 %646 }
 0x7d5   :  { %654 = vrot.lane.b32.xlu1 %v650_v12, %s3442_s21  ;;  %v651_v16 = vmul.f32 %v3176_v13, %v647_v15  ;;  %v826_v12 = vld [vmem:[#allocation2 + $0x4] sm:$0x1] }
 0x7d7   :  { %656 = vrot.lane.b32.xlu0 %v651_v16, %s3442_s21 }
 0x847   :  { %v655_v18 = vpop.permute.xlu1 %654 }
 0x848   :  { %v660_v19 = vadd.f32 %v655_v18, %v640_v17  ;;  %v827_v17 = vld [vmem:[#allocation2 + $0xc] sm:$0x1] }
 0x849   :  { %v657_v21 = vpop.permute.xlu0 %656 }
 0x84a   :  { %3177 = vtanh.f32 %v660_v19  ;;  %v661_v22 = vadd.f32 %v657_v21, %v641_v20 }
 0x84c   :  { %3179 = vtanh.f32 %v661_v22 }
 0x857   :  { %v3178_v23 = vpop.eup %3177 }
 0x858   :  { %666 = vrot.lane.b32.xlu1 %v3178_v23, %s3441_s1 }
 0x859   :  { %v3180_v24 = vpop.eup %3179 }
 0x85a   :  { %668 = vrot.lane.b32.xlu0 %v3180_v24, %s3441_s1 }
 0x8ca   :  { %v667_v29 = vpop.permute.xlu1 %666 }
 0x8cb   :  { %v3569_v32 = vmul.f32 %v3174_v8, %v667_v29 }
 0x8cc   :  { %v669_v30 = vpop.permute.xlu0 %668 }
 0x8cd   :  { %v3567_v31 = vmul.f32 %v3176_v13, %v669_v30 }
 0x8cf   :  { %v686_v33 = vrot.slane %v3567_v31, 7 }
 0x8d1   :  { %v687_v34 = vsel %vm402_vm5, %v686_v33, %v3569_v32 }
 0x8d2   :  { %688 = vrot.lane.b32.xlu0 %v687_v34, %s3442_s21 }
 0x944   :  { %v689_v35 = vpop.permute.xlu0 %688 }
 0x945   :  { %2961 = vmatmul.mubr.msk.f32.vlgmr.msra.gmra.mxu0 %vm260_vm6, %v689_v35 }
 0x946   :  { %2975 = vmatpush3.msra.mxu0 %v3465_v25  ;;  %2982 = vmatprep.mubr.msk.f32.mxu0 %vm3440_vm1, %v3439_v11 }
 0x947   :  { %2976 = vmatprep.subr.mxu0 %v3439_v11 }
 0x948   :  { %2977 = vmatpush3.msra.mxu0 %v3468_v26 }
 0x949   :  { %2978 = vmatprep.subr.mxu0 %v3439_v11 }
 0x94a   :  { %2979 = vmatpush3.msra.mxu0 %v3474_v27 }
 0x94b   :  { %2980 = vmatprep.subr.mxu0 %v3439_v11 }
 0x94c   :  { %2981 = vmatpush3.msra.mxu0 %v3478_v28 }
 0x94d   :  { %2996 = vmatprep.subr.mxu0 %v3439_v11 }
 0xa05   :  { %v758_v37 = vpop.f32.mrf.mxu0 }
 0xa06   :  { %v763_v38 = vrot.slane %v758_v37, 1  ;;  %v766_v39 = vadd.f32 %v758_v37, %v684_v36 }
 0xa07   :  { %v2962_v41 = vpop.f32.mrf.mxu0 }
 0xa08   :  { %v767_v42 = vadd.f32 %v763_v38, %v685_v40  ;;  %3181 = vtanh.f32 %v766_v39  ;;  %v2741_v45 = vmul.f32 -1.442695, %v766_v39 }
 0xa0a   :  { %3183 = vtanh.f32 %v767_v42  ;;  %v2742_v46 = vmul.f32 -1.442695, %v767_v42 }
 0xa0b   :  { %3185 = vpow2.f32 %v2741_v45 }
 0xa0c   :  { %3187 = vpow2.f32 %v2742_v46 }
 0xa15   :  { %v3182_v43 = vpop.eup %3181 }
 0xa16   :  { %786 = vrot.lane.b32.xlu0 %v3182_v43, %s3441_s1 }
 0xa17   :  { %v3184_v44 = vpop.eup %3183 }
 0xa18   :  { %788 = vrot.lane.b32.xlu1 %v3184_v44, %s3441_s1  ;;  %v3186_v47 = vpop.eup %3185 }
 0xa19   :  { %v3188_v48 = vpop.eup %3187  ;;  %v774_v49 = vadd.f32 1.0, %v3186_v47 }
 0xa1a   :  { %v775_v50 = vadd.f32 1.0, %v3188_v48 }
 0xa1b   :  { %3189 = vrcp.f32 %v774_v49 }
 0xa1c   :  { %3191 = vrcp.f32 %v775_v50 }
 0xa28   :  { %v3190_v51 = vpop.eup %3189 }
 0xa29   :  { %v3192_v56 = vpop.eup %3191  ;;  %v782_v59 = vmul.f32 %v3190_v51, %v660_v19 }
 0xa2a   :  { %v783_v62 = vmul.f32 %v3192_v56, %v661_v22 }
 0xa88   :  { %v787_v54 = vpop.permute.xlu0 %786 }
 0xa89   :  { %v792_v55 = vmul.f32 %v3190_v51, %v787_v54 }
 0xa8a   :  { %v789_v57 = vpop.permute.xlu1 %788 }
 0xa8b   :  { %796 = vrot.lane.b32.xlu0 %v792_v55, %s3442_s21  ;;  %v793_v58 = vmul.f32 %v3192_v56, %v789_v57  ;;  %v968_v57 = vld [vmem:[#allocation2 + $0x5] sm:$0x1] }
 0xa8d   :  { %798 = vrot.lane.b32.xlu1 %v793_v58, %s3442_s21 }
 0xafd   :  { %v797_v60 = vpop.permute.xlu0 %796 }
 0xafe   :  { %v802_v61 = vadd.f32 %v797_v60, %v782_v59  ;;  %v969_v60 = vld [vmem:[#allocation2 + $0xd] sm:$0x1] }
 0xaff   :  { %v799_v63 = vpop.permute.xlu1 %798 }
 0xb00   :  { %3193 = vtanh.f32 %v802_v61  ;;  %v803_v0 = vadd.f32 %v799_v63, %v783_v62 }
 0xb02   :  { %3195 = vtanh.f32 %v803_v0 }
 0xb0d   :  { %v3194_v1 = vpop.eup %3193 }
 0xb0e   :  { %808 = vrot.lane.b32.xlu0 %v3194_v1, %s3441_s1 }
 0xb0f   :  { %v3196_v2 = vpop.eup %3195 }
 0xb10   :  { %810 = vrot.lane.b32.xlu1 %v3196_v2, %s3441_s1 }
 0xb80   :  { %v809_v3 = vpop.permute.xlu0 %808 }
 0xb81   :  { %v3594_v6 = vmul.f32 %v3190_v51, %v809_v3 }
 0xb82   :  { %v811_v4 = vpop.permute.xlu1 %810 }
 0xb83   :  { %v3592_v5 = vmul.f32 %v3192_v56, %v811_v4 }
 0xb85   :  { %v828_v7 = vrot.slane %v3592_v5, 7 }
 0xb87   :  { %v829_v8 = vsel %vm402_vm5, %v828_v7, %v3594_v6 }
 0xb88   :  { %830 = vrot.lane.b32.xlu1 %v829_v8, %s3442_s21 }
 0xbfa   :  { %v831_v9 = vpop.permute.xlu1 %830 }
 0xbfb   :  { %2972 = vmatmul.mubr.msk.f32.vlgmr.msra.gmra.mxu1 %vm260_vm6, %v831_v9 }
 0xbfc   :  { %2986 = vmatpush3.msra.mxu1 %v3465_v25  ;;  %2993 = vmatprep.mubr.msk.f32.mxu1 %vm3440_vm1, %v3439_v11 }
 0xbfd   :  { %2987 = vmatprep.subr.mxu1 %v3439_v11 }
 0xbfe   :  { %2988 = vmatpush3.msra.mxu1 %v3468_v26 }
 0xbff   :  { %2989 = vmatprep.subr.mxu1 %v3439_v11 }
 0xc00   :  { %2990 = vmatpush3.msra.mxu1 %v3474_v27 }
 0xc01   :  { %2991 = vmatprep.subr.mxu1 %v3439_v11 }
 0xc02   :  { %2992 = vmatpush3.msra.mxu1 %v3478_v28 }
 0xcbb   :  { %v900_v13 = vpop.f32.mrf.mxu1 }
 0xcbc   :  { %v905_v15 = vrot.slane %v900_v13, 1  ;;  %v908_v16 = vadd.f32 %v900_v13, %v826_v12 }
 0xcbd   :  { %v2973_v18 = vpop.f32.mrf.mxu1 }
 0xcbe   :  { %v909_v19 = vadd.f32 %v905_v15, %v827_v17  ;;  %3197 = vtanh.f32 %v908_v16  ;;  %v2744_v22 = vmul.f32 -1.442695, %v908_v16 }
 0xcc0   :  { %3199 = vtanh.f32 %v909_v19  ;;  %v2745_v23 = vmul.f32 -1.442695, %v909_v19 }
 0xcc1   :  { %3201 = vpow2.f32 %v2744_v22 }
 0xcc2   :  { %3203 = vpow2.f32 %v2745_v23 }
 0xccb   :  { %v3198_v20 = vpop.eup %3197 }
 0xccc   :  { %928 = vrot.lane.b32.xlu1 %v3198_v20, %s3441_s1 }
 0xccd   :  { %v3200_v21 = vpop.eup %3199 }
 0xcce   :  { %930 = vrot.lane.b32.xlu0 %v3200_v21, %s3441_s1  ;;  %v3202_v24 = vpop.eup %3201 }
 0xccf   :  { %v3204_v29 = vpop.eup %3203  ;;  %v916_v30 = vadd.f32 1.0, %v3202_v24 }
 0xcd0   :  { %v917_v33 = vadd.f32 1.0, %v3204_v29 }
 0xcd1   :  { %3205 = vrcp.f32 %v916_v30 }
 0xcd2   :  { %3207 = vrcp.f32 %v917_v33 }
 0xcde   :  { %v3206_v34 = vpop.eup %3205 }
 0xcdf   :  { %v3208_v37 = vpop.eup %3207  ;;  %v924_v40 = vmul.f32 %v3206_v34, %v802_v61 }
 0xce0   :  { %v925_v43 = vmul.f32 %v3208_v37, %v803_v0 }
 0xd3e   :  { %v929_v35 = vpop.permute.xlu1 %928 }
 0xd3f   :  { %v934_v36 = vmul.f32 %v3206_v34, %v929_v35 }
 0xd40   :  { %v931_v38 = vpop.permute.xlu0 %930 }
 0xd41   :  { %938 = vrot.lane.b32.xlu1 %v934_v36, %s3442_s21  ;;  %v935_v39 = vmul.f32 %v3208_v37, %v931_v38  ;;  %v1110_v36 = vld [vmem:[#allocation2 + $0x6] sm:$0x1] }
 0xd43   :  { %940 = vrot.lane.b32.xlu0 %v935_v39, %s3442_s21 }
 0xdb3   :  { %v939_v41 = vpop.permute.xlu1 %938 }
 0xdb4   :  { %v944_v42 = vadd.f32 %v939_v41, %v924_v40  ;;  %v1111_v40 = vld [vmem:[#allocation2 + $0xe] sm:$0x1] }
 0xdb5   :  { %v941_v44 = vpop.permute.xlu0 %940 }
 0xdb6   :  { %3209 = vtanh.f32 %v944_v42  ;;  %v945_v45 = vadd.f32 %v941_v44, %v925_v43 }
 0xdb8   :  { %3211 = vtanh.f32 %v945_v45 }
 0xdc3   :  { %v3210_v46 = vpop.eup %3209 }
 0xdc4   :  { %950 = vrot.lane.b32.xlu1 %v3210_v46, %s3441_s1 }
 0xdc5   :  { %v3212_v47 = vpop.eup %3211 }
 0xdc6   :  { %952 = vrot.lane.b32.xlu0 %v3212_v47, %s3441_s1 }
 0xe36   :  { %v951_v48 = vpop.permute.xlu1 %950 }
 0xe37   :  { %v3618_v51 = vmul.f32 %v3206_v34, %v951_v48 }
 0xe38   :  { %v953_v49 = vpop.permute.xlu0 %952 }
 0xe39   :  { %v3616_v50 = vmul.f32 %v3208_v37, %v953_v49 }
 0xe3b   :  { %v970_v54 = vrot.slane %v3616_v50, 7 }
 0xe3d   :  { %v971_v55 = vsel %vm402_vm5, %v970_v54, %v3618_v51 }
 0xe3e   :  { %972 = vrot.lane.b32.xlu0 %v971_v55, %s3442_s21 }
 0xeb0   :  { %v973_v56 = vpop.permute.xlu0 %972 }
 0xeb1   :  { %2983 = vmatmul.mubr.msk.f32.vlgmr.msra.gmra.mxu0 %vm260_vm6, %v973_v56 }
 0xeb2   :  { %2997 = vmatpush3.msra.mxu0 %v3465_v25  ;;  %3004 = vmatprep.mubr.msk.f32.mxu0 %vm3440_vm1, %v3439_v11 }
 0xeb3   :  { %2998 = vmatprep.subr.mxu0 %v3439_v11 }
 0xeb4   :  { %2999 = vmatpush3.msra.mxu0 %v3468_v26 }
 0xeb5   :  { %3000 = vmatprep.subr.mxu0 %v3439_v11 }
 0xeb6   :  { %3001 = vmatpush3.msra.mxu0 %v3474_v27 }
 0xeb7   :  { %3002 = vmatprep.subr.mxu0 %v3439_v11 }
 0xeb8   :  { %3003 = vmatpush3.msra.mxu0 %v3478_v28 }
 0xeb9   :  { %3018 = vmatprep.subr.mxu0 %v3439_v11 }
 0xf71   :  { %v1042_v58 = vpop.f32.mrf.mxu0 }
 0xf72   :  { %v1047_v25 = vrot.slane %v1042_v58, 1  ;;  %v1050_v59 = vadd.f32 %v1042_v58, %v968_v57 }
 0xf73   :  { %v2984_v61 = vpop.f32.mrf.mxu0 }
 0xf74   :  { %v1051_v62 = vadd.f32 %v1047_v25, %v969_v60  ;;  %3213 = vtanh.f32 %v1050_v59  ;;  %v2747_v27 = vmul.f32 -1.442695, %v1050_v59 }
 0xf76   :  { %3215 = vtanh.f32 %v1051_v62  ;;  %v2748_v0 = vmul.f32 -1.442695, %v1051_v62 }
 0xf77   :  { %3217 = vpow2.f32 %v2747_v27 }
 0xf78   :  { %3219 = vpow2.f32 %v2748_v0 }
 0xf81   :  { %v3214_v26 = vpop.eup %3213 }
 0xf82   :  { %1070 = vrot.lane.b32.xlu0 %v3214_v26, %s3441_s1 }
 0xf83   :  { %v3216_v63 = vpop.eup %3215 }
 0xf84   :  { %1072 = vrot.lane.b32.xlu1 %v3216_v63, %s3441_s1  ;;  %v3218_v28 = vpop.eup %3217 }
 0xf85   :  { %v3220_v1 = vpop.eup %3219  ;;  %v1058_v2 = vadd.f32 1.0, %v3218_v28 }
 0xf86   :  { %v1059_v3 = vadd.f32 1.0, %v3220_v1 }
 0xf87   :  { %3221 = vrcp.f32 %v1058_v2 }
 0xf88   :  { %3223 = vrcp.f32 %v1059_v3 }
 0xf94   :  { %v3222_v4 = vpop.eup %3221 }
 0xf95   :  { %v3224_v9 = vpop.eup %3223  ;;  %v1066_v15 = vmul.f32 %v3222_v4, %v944_v42 }
 0xf96   :  { %v1067_v18 = vmul.f32 %v3224_v9, %v945_v45 }
 0xff4   :  { %v1071_v7 = vpop.permute.xlu0 %1070 }
 0xff5   :  { %v1076_v8 = vmul.f32 %v3222_v4, %v1071_v7 }
 0xff6   :  { %v1073_v12 = vpop.permute.xlu1 %1072 }
 0xff7   :  { %1080 = vrot.lane.b32.xlu0 %v1076_v8, %s3442_s21  ;;  %v1077_v13 = vmul.f32 %v3224_v9, %v1073_v12  ;;  %v1252_v12 = vld [vmem:[#allocation2 + $0x7] sm:$0x1] }
 0xff9   :  { %1082 = vrot.lane.b32.xlu1 %v1077_v13, %s3442_s21 }
0x1069   :  { %v1081_v16 = vpop.permute.xlu0 %1080 }
0x106a   :  { %v1086_v17 = vadd.f32 %v1081_v16, %v1066_v15 }
0x106b   :  { %v1083_v19 = vpop.permute.xlu1 %1082 }
0x106c   :  { %3225 = vtanh.f32 %v1086_v17  ;;  %v1087_v20 = vadd.f32 %v1083_v19, %v1067_v18 }
0x106e   :  { %3227 = vtanh.f32 %v1087_v20 }
0x1079   :  { %v3226_v21 = vpop.eup %3225 }
0x107a   :  { %1092 = vrot.lane.b32.xlu0 %v3226_v21, %s3441_s1 }
0x107b   :  { %v3228_v22 = vpop.eup %3227 }
0x107c   :  { %1094 = vrot.lane.b32.xlu1 %v3228_v22, %s3441_s1 }
0x10ec   :  { %v1093_v23 = vpop.permute.xlu0 %1092 }
0x10ed   :  { %v3643_v30 = vmul.f32 %v3222_v4, %v1093_v23 }
0x10ee   :  { %v1095_v24 = vpop.permute.xlu1 %1094 }
0x10ef   :  { %v3641_v29 = vmul.f32 %v3224_v9, %v1095_v24 }
0x10f1   :  { %v1112_v33 = vrot.slane %v3641_v29, 7 }
0x10f3   :  { %v1113_v34 = vsel %vm402_vm5, %v1112_v33, %v3643_v30 }
0x10f4   :  { %1114 = vrot.lane.b32.xlu1 %v1113_v34, %s3442_s21 }
0x1166   :  { %v1115_v35 = vpop.permute.xlu1 %1114 }
0x1167   :  { %2994 = vmatmul.mubr.msk.f32.vlgmr.msra.gmra.mxu1 %vm260_vm6, %v1115_v35 }
0x1227   :  { %v1184_v37 = vpop.f32.mrf.mxu1 }
0x1228   :  { %v1189_v38 = vrot.slane %v1184_v37, 1  ;;  %v1192_v39 = vadd.f32 %v1184_v37, %v1110_v36 }
0x1229   :  { %v2995_v41 = vpop.f32.mrf.mxu1 }
0x122a   :  { %v1193_v42 = vadd.f32 %v1189_v38, %v1111_v40  ;;  %3229 = vtanh.f32 %v1192_v39  ;;  %v2750_v45 = vmul.f32 -1.442695, %v1192_v39 }
0x122c   :  { %3231 = vtanh.f32 %v1193_v42  ;;  %v2751_v46 = vmul.f32 -1.442695, %v1193_v42 }
0x122d   :  { %3233 = vpow2.f32 %v2750_v45 }
0x122e   :  { %3235 = vpow2.f32 %v2751_v46 }
0x1237   :  { %v3230_v43 = vpop.eup %3229 }
0x1238   :  { %1212 = vrot.lane.b32.xlu1 %v3230_v43, %s3441_s1 }
0x1239   :  { %v3232_v44 = vpop.eup %3231 }
0x123a   :  { %1214 = vrot.lane.b32.xlu0 %v3232_v44, %s3441_s1  ;;  %v3234_v47 = vpop.eup %3233 }
0x123b   :  { %v3236_v48 = vpop.eup %3235  ;;  %v1200_v49 = vadd.f32 1.0, %v3234_v47 }
0x123c   :  { %v1201_v54 = vadd.f32 1.0, %v3236_v48 }
0x123d   :  { %3237 = vrcp.f32 %v1200_v49 }
0x123e   :  { %3239 = vrcp.f32 %v1201_v54 }
0x124a   :  { %v3238_v55 = vpop.eup %3237 }
0x124b   :  { %v3240_v58 = vpop.eup %3239  ;;  %v1208_v60 = vmul.f32 %v3238_v55, %v1086_v17  ;;  %v1253_v17 = vld [vmem:[#allocation2 + $0xf] sm:$0x1] }
0x124c   :  { %v1209_v26 = vmul.f32 %v3240_v58, %v1087_v20 }
0x12aa   :  { %v1213_v56 = vpop.permute.xlu1 %1212 }
0x12ab   :  { %v1218_v57 = vmul.f32 %v3238_v55, %v1213_v56 }
0x12ac   :  { %v1215_v25 = vpop.permute.xlu0 %1214 }
0x12ad   :  { %1222 = vrot.lane.b32.xlu1 %v1218_v57, %s3442_s21  ;;  %v1219_v59 = vmul.f32 %v3240_v58, %v1215_v25 }
0x12af   :  { %1224 = vrot.lane.b32.xlu0 %v1219_v59, %s3442_s21 }
0x131f   :  { %v1223_v61 = vpop.permute.xlu1 %1222 }
0x1320   :  { %v1228_v62 = vadd.f32 %v1223_v61, %v1208_v60 }
0x1321   :  { %v1225_v63 = vpop.permute.xlu0 %1224 }
0x1322   :  { %3241 = vtanh.f32 %v1228_v62  ;;  %v1229_v27 = vadd.f32 %v1225_v63, %v1209_v26 }
0x1324   :  { %3243 = vtanh.f32 %v1229_v27 }
0x132f   :  { %v3242_v0 = vpop.eup %3241 }
0x1330   :  { %1234 = vrot.lane.b32.xlu1 %v3242_v0, %s3441_s1 }
0x1331   :  { %v3244_v28 = vpop.eup %3243 }
0x1332   :  { %1236 = vrot.lane.b32.xlu0 %v3244_v28, %s3441_s1 }
0x13a2   :  { %v1235_v1 = vpop.permute.xlu1 %1234 }
0x13a3   :  { %v1240_v4 = vmul.f32 %v3238_v55, %v1235_v1 }
0x13a4   :  { %v1237_v2 = vpop.permute.xlu0 %1236 }
0x13a5   :  { %v3656_v3 = vmul.f32 %v3240_v58, %v1237_v2 }
0x13a7   :  { %v1254_v7 = vrot.slane %v3656_v3, 7 }
0x13a9   :  { %v1255_v8 = vsel %vm402_vm5, %v1254_v7, %v1240_v4 }
0x13aa   :  { %1256 = vrot.lane.b32.xlu0 %v1255_v8, %s3442_s21  ;;  %v2755_v8 = vld [vmem:[#allocation6 + $0xa8] ss:$0 sm:$0xff] }
0x141c   :  { %v1257_v9 = vpop.permute.xlu0 %1256 }
0x141d   :  { %3005 = vmatmul.mubr.msk.f32.vlgmr.msra.gmra.mxu0 %vm260_vm6, %v1257_v9 }
0x141e   :  { %3026 = vmatprep.mubr.msk.f32.mxu0 %vm3440_vm1, %v3439_v11 }
0x14dd   :  { %v1326_v13 = vpop.f32.mrf.mxu0 }
0x14de   :  { %v1331_v15 = vrot.slane %v1326_v13, 1  ;;  %v1334_v16 = vadd.f32 %v1326_v13, %v1252_v12 }
0x14df   :  { %v3006_v18 = vpop.f32.mrf.mxu0 }
0x14e0   :  { %v1335_v19 = vadd.f32 %v1331_v15, %v1253_v17  ;;  %3245 = vtanh.f32 %v1334_v16  ;;  %v2753_v22 = vmul.f32 -1.442695, %v1334_v16 }
0x14e2   :  { %3247 = vtanh.f32 %v1335_v19  ;;  %v2754_v23 = vmul.f32 -1.442695, %v1335_v19 }
0x14e3   :  { %3249 = vpow2.f32 %v2753_v22 }
0x14e4   :  { %3251 = vpow2.f32 %v2754_v23 }
0x14ed   :  { %v3246_v20 = vpop.eup %3245 }
0x14ee   :  { %1354 = vrot.lane.b32.xlu1 %v3246_v20, %s3441_s1 }
0x14ef   :  { %v3248_v21 = vpop.eup %3247 }
0x14f0   :  { %1356 = vrot.lane.b32.xlu0 %v3248_v21, %s3441_s1  ;;  %v3250_v24 = vpop.eup %3249 }
0x14f1   :  { %v3252_v33 = vpop.eup %3251  ;;  %v1342_v34 = vadd.f32 1.0, %v3250_v24 }
0x14f2   :  { %v1343_v35 = vadd.f32 1.0, %v3252_v33 }
0x14f3   :  { %3253 = vrcp.f32 %v1342_v34 }
0x14f4   :  { %3255 = vrcp.f32 %v1343_v35 }
0x1500   :  { %v3254_v36 = vpop.eup %3253 }
0x1501   :  { %v3256_v39 = vpop.eup %3255  ;;  %v1350_v42 = vmul.f32 %v3254_v36, %v1228_v62 }
0x1502   :  { %v1351_v45 = vmul.f32 %v3256_v39, %v1229_v27 }
0x1560   :  { %v1355_v37 = vpop.permute.xlu1 %1354 }
0x1561   :  { %v1360_v38 = vmul.f32 %v3254_v36, %v1355_v37 }
0x1562   :  { %v1357_v40 = vpop.permute.xlu0 %1356 }
0x1563   :  { %1364 = vrot.lane.b32.xlu1 %v1360_v38, %s3442_s21  ;;  %v1361_v41 = vmul.f32 %v3256_v39, %v1357_v40 }
0x1565   :  { %1366 = vrot.lane.b32.xlu0 %v1361_v41, %s3442_s21 }
0x15d5   :  { %v1365_v43 = vpop.permute.xlu1 %1364 }
0x15d6   :  { %v1370_v44 = vadd.f32 %v1365_v43, %v1350_v42 }
0x15d7   :  { %v1367_v46 = vpop.permute.xlu0 %1366 }
0x15d8   :  { %3257 = vtanh.f32 %v1370_v44  ;;  %v1371_v47 = vadd.f32 %v1367_v46, %v1351_v45 }
0x15da   :  { %3259 = vtanh.f32 %v1371_v47 }
0x15e5   :  { %v3258_v48 = vpop.eup %3257 }
0x15e6   :  { %1376 = vrot.lane.b32.xlu1 %v3258_v48, %s3441_s1 }
0x15e7   :  { %v3260_v49 = vpop.eup %3259 }
0x15e8   :  { %1378 = vrot.lane.b32.xlu0 %v3260_v49, %s3441_s1 }
0x15ea   :  { %390 = vrot.lane.b32.xlu1 %v3519_v14, %s3442_s21  ;;  %v1399_v14 = vld [vmem:[#allocation6 + $0xa0] sm:$0xff] }
0x15eb   :  { %3007 = vmatprep.subr.mxu1 %v1399_v14 }
0x15ec   :  { %534 = vrot.lane.b32.xlu0 %v3544_v53, %s3442_s21  ;;  %3008 = vmatpush3.msra.mxu1 %v1399_v14  ;;  %v1396_v53 = vld [vmem:[#allocation6 + $0x88] sm:$0xff] }
0x15ee   :  { %676 = vrot.lane.b32.xlu1 %v3569_v32, %s3442_s21  ;;  %v3697_v32 = vld [vmem:[#allocation6 + $0xc8] sm:$0xff] }
0x15ef   :  { %3019 = vmatpush3.msra.mxu0 %v3697_v32 }
0x15f0   :  { %818 = vrot.lane.b32.xlu0 %v3594_v6, %s3442_s21  ;;  %3020 = vmatprep.subr.mxu0 %v3439_v11  ;;  %v3701_v6 = vld [vmem:[#allocation6 + $0xc0] sm:$0xff] }
0x15f1   :  { %3021 = vmatpush3.msra.mxu0 %v3701_v6 }
0x15f2   :  { %960 = vrot.lane.b32.xlu1 %v3618_v51, %s3442_s21  ;;  %3022 = vmatprep.subr.mxu0 %v3439_v11 }
0x15f4   :  { %1102 = vrot.lane.b32.xlu0 %v3643_v30, %s3442_s21  ;;  %v3708_v30 = vld [vmem:[#allocation6 + $0xb0] sm:$0xff] }
0x15f6   :  { %1244 = vrot.lane.b32.xlu1 %v1240_v4, %s3442_s21 }
0x15f8   :  { %536 = vrot.lane.b32.xlu0 %v3542_v52, %s3442_s21  ;;  %v1398_v52 = vld [vmem:[#allocation6 + $0x98] sm:$0xff] }
0x15f9   :  { %3009 = vmatprep.subr.mxu1 %v1398_v52 }
0x15fa   :  { %392 = vrot.lane.b32.xlu1 %v3516_v10, %s3442_s21  ;;  %v1397_v10 = vld [vmem:[#allocation6 + $0x90] sm:$0xff]  ;;  %3010 = vmatpush3.msra.mxu1 %v1398_v52 }
0x15fb   :  { %3011 = vmatprep.subr.mxu1 %v1397_v10 }
0x15fc   :  { %820 = vrot.lane.b32.xlu0 %v3592_v5, %s3442_s21  ;;  %3012 = vmatpush3.msra.mxu1 %v1397_v10 }
0x15fd   :  { %3013 = vmatprep.subr.mxu1 %v1396_v53 }
0x15fe   :  { %678 = vrot.lane.b32.xlu1 %v3567_v31, %s3442_s21  ;;  %3014 = vmatpush3.msra.mxu1 %v1396_v53 }
0x15ff   :  { %3029 = vmatprep.subr.mxu1 %v3439_v11 }
0x1600   :  { %1104 = vrot.lane.b32.xlu0 %v3641_v29, %s3442_s21 }
0x1602   :  { %962 = vrot.lane.b32.xlu1 %v3616_v50, %s3442_s21  ;;  %v3703_v50 = vld [vmem:[#allocation6 + $0xb8] sm:$0xff] }
0x1603   :  { %3023 = vmatpush3.msra.mxu0 %v3703_v50 }
0x1604   :  { %3024 = vmatprep.subr.mxu0 %v3439_v11 }
0x1605   :  { %3025 = vmatpush3.msra.mxu0 %v3708_v30 }
0x1606   :  { %1246 = vrot.lane.b32.xlu1 %v3656_v3, %s3442_s21  ;;  %3027 = vmatmul.mubr.f32.vlgmr.msra.gmra.mxu0 %v3439_v11 }
0x1607   :  { %3040 = vmatprep.subr.mxu0 %v3439_v11  ;;  %3048 = vmatprep.mubr.msk.f32.mxu0 %vm3440_vm1, %v3439_v11 }
0x1608   :  { %3041 = vmatpush3.msra.mxu0 %v3697_v32 }
0x1609   :  { %3042 = vmatprep.subr.mxu0 %v3439_v11 }
0x160a   :  { %3043 = vmatpush3.msra.mxu0 %v3701_v6 }
0x160b   :  { %3044 = vmatprep.subr.mxu0 %v3439_v11 }
0x160c   :  { %3045 = vmatpush3.msra.mxu0 %v3703_v50 }
0x160d   :  { %3046 = vmatprep.subr.mxu0 %v3439_v11 }
0x160e   :  { %3047 = vmatpush3.msra.mxu0 %v3708_v30 }
0x160f   :  { %3062 = vmatprep.subr.mxu0 %v3439_v11 }
0x1658   :  { %v1377_v31 = vpop.permute.xlu1 %1376 }
0x1659   :  { %v1382_v5 = vmul.f32 %v3254_v36, %v1377_v31 }
0x165a   :  { %v1379_v51 = vpop.permute.xlu0 %1378 }
0x165b   :  { %1386 = vrot.lane.b32.xlu0 %v1382_v5, %s3442_s21  ;;  %v1383_v54 = vmul.f32 %v3256_v39, %v1379_v51 }
0x165c   :  { %v391_v29 = vpop.permute.xlu1 %390 }
0x165d   :  { %397 = vst.msk [vmem:[#allocation3] sm:$0x1] %vm396_vm7, %v391_v29 }
0x165e   :  { %v535_v55 = vpop.permute.xlu0 %534 }
0x165f   :  { %1388 = vrot.lane.b32.xlu0 %v1383_v54, %s3442_s21  ;;  %540 = vst.msk [vmem:[#allocation3 + $0x1] sm:$0x1] %vm396_vm7, %v535_v55 }
0x1660   :  { %v677_v56 = vpop.permute.xlu1 %676 }
0x1661   :  { %682 = vst.msk [vmem:[#allocation3 + $0x2] sm:$0x1] %vm396_vm7, %v677_v56 }
0x1662   :  { %v819_v57 = vpop.permute.xlu0 %818 }
0x1663   :  { %824 = vst.msk [vmem:[#allocation3 + $0x3] sm:$0x1] %vm396_vm7, %v819_v57 }
0x1664   :  { %v961_v58 = vpop.permute.xlu1 %960 }
0x1665   :  { %966 = vst.msk [vmem:[#allocation3 + $0x4] sm:$0x1] %vm396_vm7, %v961_v58 }
0x1666   :  { %v1103_v25 = vpop.permute.xlu0 %1102 }
0x1667   :  { %1108 = vst.msk [vmem:[#allocation3 + $0x5] sm:$0x1] %vm396_vm7, %v1103_v25 }
0x1668   :  { %v1245_v59 = vpop.permute.xlu1 %1244 }
0x1669   :  { %1250 = vst.msk [vmem:[#allocation3 + $0x6] sm:$0x1] %vm396_vm7, %v1245_v59 }
0x166a   :  { %v537_v60 = vpop.permute.xlu0 %536 }
0x166b   :  { %541 = vst.msk [vmem:[#allocation3 + $0x9] sm:$0x1] %vm396_vm7, %v537_v60 }
0x166c   :  { %v393_v61 = vpop.permute.xlu1 %392 }
0x166d   :  { %398 = vst.msk [vmem:[#allocation3 + $0x8] sm:$0x1] %vm396_vm7, %v393_v61 }
0x166e   :  { %v821_v62 = vpop.permute.xlu0 %820 }
0x166f   :  { %825 = vst.msk [vmem:[#allocation3 + $0xb] sm:$0x1] %vm396_vm7, %v821_v62 }
0x1670   :  { %v679_v26 = vpop.permute.xlu1 %678 }
0x1671   :  { %683 = vst.msk [vmem:[#allocation3 + $0xa] sm:$0x1] %vm396_vm7, %v679_v26 }
0x1672   :  { %v1105_v63 = vpop.permute.xlu0 %1104 }
0x1673   :  { %1109 = vst.msk [vmem:[#allocation3 + $0xd] sm:$0x1] %vm396_vm7, %v1105_v63 }
0x1674   :  { %v963_v27 = vpop.permute.xlu1 %962 }
0x1675   :  { %967 = vst.msk [vmem:[#allocation3 + $0xc] sm:$0x1] %vm396_vm7, %v963_v27 }
0x1678   :  { %v1247_v0 = vpop.permute.xlu1 %1246 }
0x1679   :  { %1251 = vst.msk [vmem:[#allocation3 + $0xe] sm:$0x1] %vm396_vm7, %v1247_v0 }
0x16c6   :  { %v1560_v4 = vpop.f32.mrf.mxu0 }
0x16c7   :  { %v1565_v16 = vrot.slane %v1560_v4, 1 }
0x16c8   :  { %v3028_v7 = vpop.f32.mrf.mxu0 }
0x16cd   :  { %v1387_v28 = vpop.permute.xlu0 %1386 }
0x16ce   :  { %1392 = vst.msk [vmem:[#allocation3 + $0x7] sm:$0x1] %vm396_vm7, %v1387_v28 }
0x16d1   :  { %v1389_v1 = vpop.permute.xlu0 %1388 }
0x16d2   :  { %1393 = vst.msk [vmem:[#allocation3 + $0xf] sm:$0x1] %vm396_vm7, %v1389_v1 }
0x16d5   :  { %v1394_v2 = vld [vmem:[#allocation3] sm:$0xff] }
0x16d6   :  { %3015 = vmatprep.mubr.msk.f32.mxu1 %vm260_vm6, %v1394_v2 }
0x16d9   :  { %v1395_v3 = vld [vmem:[#allocation3 + $0x8] sm:$0xff] }
0x16da   :  { %3016 = vmatmul.mubr.msk.f32.vlgmr.msra.gmra.mxu1 %vm260_vm6, %v1395_v3 }
0x16db   :  { %3030 = vmatpush3.msra.mxu1 %v3697_v32  ;;  %3037 = vmatprep.mubr.msk.f32.mxu1 %vm3440_vm1, %v3439_v11 }
0x16dc   :  { %3031 = vmatprep.subr.mxu1 %v3439_v11 }
0x16dd   :  { %3032 = vmatpush3.msra.mxu1 %v3701_v6 }
0x16de   :  { %3033 = vmatprep.subr.mxu1 %v3439_v11 }
0x16df   :  { %3034 = vmatpush3.msra.mxu1 %v3703_v50 }
0x16e0   :  { %3035 = vmatprep.subr.mxu1 %v3439_v11 }
0x16e1   :  { %3036 = vmatpush3.msra.mxu1 %v3708_v30 }
0x16e2   :  { %3051 = vmatprep.subr.mxu1 %v3439_v11 }
0x179a   :  { %v3017_v9 = vpop.f32.mrf.mxu1 }
0x179b   :  { %v1483_v12 = vadd.f32 %v3017_v9, %v2755_v8 }
0x179c   :  { %v1477_v13 = vpop.f32.mrf.mxu1 }
0x179d   :  { %1487 = vst [vmem:[#allocation2 + $0x8] sm:$0xff] %v1483_v12  ;;  %v1478_v15 = vadd.f32 %v2755_v8, %v1477_v13 }
0x179f   :  { %1486 = vst [vmem:[#allocation2] sm:$0xff] %v1478_v15 }
0x17a4   :  { %v1493_v17 = vld [vmem:[#allocation2 + $0x8] sm:$0x1]  ;;  %v1629_v58 = vld [vmem:[#allocation2 + $0x9] sm:$0x1] }
0x17a5   :  { %v1569_v18 = vadd.f32 %v1565_v16, %v1493_v17 }
0x17a6   :  { %v1492_v19 = vld [vmem:[#allocation2] sm:$0x1]  ;;  %v1628_v54 = vld [vmem:[#allocation2 + $0x1] sm:$0x1] }
0x17a7   :  { %v1568_v20 = vadd.f32 %v1560_v4, %v1492_v19  ;;  %3261 = vtanh.f32 %v1569_v18  ;;  %v2759_v23 = vmul.f32 -1.442695, %v1569_v18 }
0x17a9   :  { %3263 = vtanh.f32 %v1568_v20  ;;  %v2758_v24 = vmul.f32 -1.442695, %v1568_v20 }
0x17aa   :  { %3265 = vpow2.f32 %v2759_v23 }
0x17ab   :  { %3267 = vpow2.f32 %v2758_v24 }
0x17b4   :  { %v3262_v21 = vpop.eup %3261 }
0x17b5   :  { %1590 = vrot.lane.b32.xlu1 %v3262_v21, %s3441_s1 }
0x17b6   :  { %v3264_v22 = vpop.eup %3263 }
0x17b7   :  { %1588 = vrot.lane.b32.xlu0 %v3264_v22, %s3441_s1  ;;  %v3266_v33 = vpop.eup %3265 }
0x17b8   :  { %v3268_v34 = vpop.eup %3267  ;;  %v1577_v35 = vadd.f32 1.0, %v3266_v33 }
0x17b9   :  { %v1576_v36 = vadd.f32 1.0, %v3268_v34 }
0x17ba   :  { %3269 = vrcp.f32 %v1577_v35  ;;  %v1770_v35 = vld [vmem:[#allocation2 + $0x2] sm:$0x1] }
0x17bb   :  { %3271 = vrcp.f32 %v1576_v36 }
0x17c7   :  { %v3270_v37 = vpop.eup %3269 }
0x17c8   :  { %v3272_v40 = vpop.eup %3271  ;;  %v1585_v43 = vmul.f32 0.0, %v3270_v37 }
0x17c9   :  { %v1584_v46 = vmul.f32 0.0, %v3272_v40 }
0x1827   :  { %v1591_v38 = vpop.permute.xlu1 %1590 }
0x1828   :  { %v1595_v39 = vmul.f32 %v3270_v37, %v1591_v38 }
0x1829   :  { %v1589_v41 = vpop.permute.xlu0 %1588 }
0x182a   :  { %1600 = vrot.lane.b32.xlu1 %v1595_v39, %s3442_s21  ;;  %v1594_v42 = vmul.f32 %v3272_v40, %v1589_v41  ;;  %v1771_v39 = vld [vmem:[#allocation2 + $0xa] sm:$0x1] }
0x182c   :  { %1598 = vrot.lane.b32.xlu0 %v1594_v42, %s3442_s21 }
0x189c   :  { %v1601_v44 = vpop.permute.xlu1 %1600 }
0x189d   :  { %v1605_v45 = vadd.f32 %v1601_v44, %v1585_v43 }
0x189e   :  { %v1599_v47 = vpop.permute.xlu0 %1598 }
0x189f   :  { %3273 = vtanh.f32 %v1605_v45  ;;  %v1604_v48 = vadd.f32 %v1599_v47, %v1584_v46 }
0x18a1   :  { %3275 = vtanh.f32 %v1604_v48 }
0x18ac   :  { %v3274_v49 = vpop.eup %3273 }
0x18ad   :  { %1612 = vrot.lane.b32.xlu1 %v3274_v49, %s3441_s1 }
0x18ae   :  { %v3276_v14 = vpop.eup %3275 }
0x18af   :  { %1610 = vrot.lane.b32.xlu0 %v3276_v14, %s3441_s1 }
0x191f   :  { %v1613_v52 = vpop.permute.xlu1 %1612 }
0x1920   :  { %v3761_v10 = vmul.f32 %v3270_v37, %v1613_v52 }
0x1921   :  { %v1611_v31 = vpop.permute.xlu0 %1610 }
0x1922   :  { %v1630_v53 = vrot.slane %v3761_v10, 7  ;;  %v3764_v5 = vmul.f32 %v3272_v40, %v1611_v31 }
0x1924   :  { %v1631_v51 = vsel %vm402_vm5, %v1630_v53, %v3764_v5 }
0x1925   :  { %1632 = vrot.lane.b32.xlu1 %v1631_v51, %s3442_s21 }
0x1997   :  { %v1633_v29 = vpop.permute.xlu1 %1632 }
0x1998   :  { %3038 = vmatmul.mubr.msk.f32.vlgmr.msra.gmra.mxu1 %vm260_vm6, %v1633_v29 }
0x1999   :  { %3052 = vmatpush3.msra.mxu1 %v3697_v32  ;;  %3059 = vmatprep.mubr.msk.f32.mxu1 %vm3440_vm1, %v3439_v11 }
0x199a   :  { %3053 = vmatprep.subr.mxu1 %v3439_v11 }
0x199b   :  { %3054 = vmatpush3.msra.mxu1 %v3701_v6 }
0x199c   :  { %3055 = vmatprep.subr.mxu1 %v3439_v11 }
0x199d   :  { %3056 = vmatpush3.msra.mxu1 %v3703_v50 }
0x199e   :  { %3057 = vmatprep.subr.mxu1 %v3439_v11 }
0x199f   :  { %3058 = vmatpush3.msra.mxu1 %v3708_v30 }
0x19a0   :  { %3073 = vmatprep.subr.mxu1 %v3439_v11 }
0x1a58   :  { %v1702_v55 = vpop.f32.mrf.mxu1 }
0x1a59   :  { %v1707_v56 = vrot.slane %v1702_v55, 1  ;;  %v1710_v57 = vadd.f32 %v1702_v55, %v1628_v54 }
0x1a5a   :  { %v3039_v25 = vpop.f32.mrf.mxu1 }
0x1a5b   :  { %v1711_v59 = vadd.f32 %v1707_v56, %v1629_v58  ;;  %3277 = vtanh.f32 %v1710_v57  ;;  %v2761_v62 = vmul.f32 -1.442695, %v1710_v57 }
0x1a5d   :  { %3279 = vtanh.f32 %v1711_v59  ;;  %v2762_v26 = vmul.f32 -1.442695, %v1711_v59 }
0x1a5e   :  { %3281 = vpow2.f32 %v2761_v62 }
0x1a5f   :  { %3283 = vpow2.f32 %v2762_v26 }
0x1a68   :  { %v3278_v60 = vpop.eup %3277 }
0x1a69   :  { %1730 = vrot.lane.b32.xlu1 %v3278_v60, %s3441_s1 }
0x1a6a   :  { %v3280_v61 = vpop.eup %3279 }
0x1a6b   :  { %1732 = vrot.lane.b32.xlu0 %v3280_v61, %s3441_s1  ;;  %v3282_v63 = vpop.eup %3281 }
0x1a6c   :  { %v3284_v27 = vpop.eup %3283  ;;  %v1718_v0 = vadd.f32 1.0, %v3282_v63 }
0x1a6d   :  { %v1719_v28 = vadd.f32 1.0, %v3284_v27 }
0x1a6e   :  { %3285 = vrcp.f32 %v1718_v0 }
0x1a6f   :  { %3287 = vrcp.f32 %v1719_v28 }
0x1a7b   :  { %v3286_v1 = vpop.eup %3285 }
0x1a7c   :  { %v3288_v4 = vpop.eup %3287  ;;  %v1726_v9 = vmul.f32 %v3286_v1, %v1604_v48 }
0x1a7d   :  { %v1727_v15 = vmul.f32 %v3288_v4, %v1605_v45 }
0x1adb   :  { %v1731_v2 = vpop.permute.xlu1 %1730 }
0x1adc   :  { %v1736_v3 = vmul.f32 %v3286_v1, %v1731_v2 }
0x1add   :  { %v1733_v7 = vpop.permute.xlu0 %1732 }
0x1ade   :  { %1740 = vrot.lane.b32.xlu1 %v1736_v3, %s3442_s21  ;;  %v1737_v8 = vmul.f32 %v3288_v4, %v1733_v7  ;;  %v1913_v7 = vld [vmem:[#allocation2 + $0xb] sm:$0x1] }
0x1ae0   :  { %1742 = vrot.lane.b32.xlu0 %v1737_v8, %s3442_s21 }
0x1b50   :  { %v1741_v12 = vpop.permute.xlu1 %1740 }
0x1b51   :  { %v1746_v13 = vadd.f32 %v1741_v12, %v1726_v9 }
0x1b52   :  { %v1743_v16 = vpop.permute.xlu0 %1742 }
0x1b53   :  { %3289 = vtanh.f32 %v1746_v13  ;;  %v1747_v17 = vadd.f32 %v1743_v16, %v1727_v15 }
0x1b55   :  { %3291 = vtanh.f32 %v1747_v17 }
0x1b60   :  { %v3290_v18 = vpop.eup %3289 }
0x1b61   :  { %1752 = vrot.lane.b32.xlu1 %v3290_v18, %s3441_s1 }
0x1b62   :  { %v3292_v19 = vpop.eup %3291 }
0x1b63   :  { %1754 = vrot.lane.b32.xlu0 %v3292_v19, %s3441_s1 }
0x1bd3   :  { %v1753_v20 = vpop.permute.xlu1 %1752 }
0x1bd4   :  { %v3788_v23 = vmul.f32 %v3286_v1, %v1753_v20  ;;  %v1912_v1 = vld [vmem:[#allocation2 + $0x3] sm:$0x1] }
0x1bd5   :  { %v1755_v21 = vpop.permute.xlu0 %1754 }
0x1bd6   :  { %v3786_v22 = vmul.f32 %v3288_v4, %v1755_v21 }
0x1bd8   :  { %v1772_v24 = vrot.slane %v3786_v22, 7 }
0x1bda   :  { %v1773_v33 = vsel %vm402_vm5, %v1772_v24, %v3788_v23 }
0x1bdb   :  { %1774 = vrot.lane.b32.xlu0 %v1773_v33, %s3442_s21 }
0x1c4d   :  { %v1775_v34 = vpop.permute.xlu0 %1774 }
0x1c4e   :  { %3049 = vmatmul.mubr.msk.f32.vlgmr.msra.gmra.mxu0 %vm260_vm6, %v1775_v34 }
0x1c4f   :  { %3063 = vmatpush3.msra.mxu0 %v3697_v32  ;;  %3070 = vmatprep.mubr.msk.f32.mxu0 %vm3440_vm1, %v3439_v11 }
0x1c50   :  { %3064 = vmatprep.subr.mxu0 %v3439_v11 }
0x1c51   :  { %3065 = vmatpush3.msra.mxu0 %v3701_v6 }
0x1c52   :  { %3066 = vmatprep.subr.mxu0 %v3439_v11 }
0x1c53   :  { %3067 = vmatpush3.msra.mxu0 %v3703_v50 }
0x1c54   :  { %3068 = vmatprep.subr.mxu0 %v3439_v11 }
0x1c55   :  { %3069 = vmatpush3.msra.mxu0 %v3708_v30 }
0x1c56   :  { %3084 = vmatprep.subr.mxu0 %v3439_v11 }
0x1d0e   :  { %v1844_v36 = vpop.f32.mrf.mxu0 }
0x1d0f   :  { %v1849_v37 = vrot.slane %v1844_v36, 1  ;;  %v1852_v38 = vadd.f32 %v1844_v36, %v1770_v35 }
0x1d10   :  { %v3050_v40 = vpop.f32.mrf.mxu0 }
0x1d11   :  { %v1853_v41 = vadd.f32 %v1849_v37, %v1771_v39  ;;  %3293 = vtanh.f32 %v1852_v38  ;;  %v2764_v44 = vmul.f32 -1.442695, %v1852_v38 }
0x1d13   :  { %3295 = vtanh.f32 %v1853_v41  ;;  %v2765_v45 = vmul.f32 -1.442695, %v1853_v41 }
0x1d14   :  { %3297 = vpow2.f32 %v2764_v44 }
0x1d15   :  { %3299 = vpow2.f32 %v2765_v45 }
0x1d1e   :  { %v3294_v42 = vpop.eup %3293 }
0x1d1f   :  { %1872 = vrot.lane.b32.xlu0 %v3294_v42, %s3441_s1 }
0x1d20   :  { %v3296_v43 = vpop.eup %3295 }
0x1d21   :  { %1874 = vrot.lane.b32.xlu1 %v3296_v43, %s3441_s1  ;;  %v3298_v46 = vpop.eup %3297 }
0x1d22   :  { %v3300_v47 = vpop.eup %3299  ;;  %v1860_v48 = vadd.f32 1.0, %v3298_v46 }
0x1d23   :  { %v1861_v49 = vadd.f32 1.0, %v3300_v47 }
0x1d24   :  { %3301 = vrcp.f32 %v1860_v48 }
0x1d25   :  { %3303 = vrcp.f32 %v1861_v49 }
0x1d31   :  { %v3302_v14 = vpop.eup %3301 }
0x1d32   :  { %v3304_v31 = vpop.eup %3303  ;;  %v1868_v54 = vmul.f32 %v3302_v14, %v1746_v13 }
0x1d33   :  { %v1869_v57 = vmul.f32 %v3304_v31, %v1747_v17 }
0x1d91   :  { %v1873_v52 = vpop.permute.xlu0 %1872 }
0x1d92   :  { %v1878_v53 = vmul.f32 %v3302_v14, %v1873_v52 }
0x1d93   :  { %v1875_v51 = vpop.permute.xlu1 %1874 }
0x1d94   :  { %1882 = vrot.lane.b32.xlu0 %v1878_v53, %s3442_s21  ;;  %v1879_v29 = vmul.f32 %v3304_v31, %v1875_v51  ;;  %v2054_v53 = vld [vmem:[#allocation2 + $0x4] sm:$0x1] }
0x1d96   :  { %1884 = vrot.lane.b32.xlu1 %v1879_v29, %s3442_s21 }
0x1e06   :  { %v1883_v55 = vpop.permute.xlu0 %1882 }
0x1e07   :  { %v1888_v56 = vadd.f32 %v1883_v55, %v1868_v54  ;;  %v2055_v54 = vld [vmem:[#allocation2 + $0xc] sm:$0x1] }
0x1e08   :  { %v1885_v58 = vpop.permute.xlu1 %1884 }
0x1e09   :  { %3305 = vtanh.f32 %v1888_v56  ;;  %v1889_v25 = vadd.f32 %v1885_v58, %v1869_v57 }
0x1e0b   :  { %3307 = vtanh.f32 %v1889_v25 }
0x1e16   :  { %v3306_v59 = vpop.eup %3305 }
0x1e17   :  { %1894 = vrot.lane.b32.xlu0 %v3306_v59, %s3441_s1 }
0x1e18   :  { %v3308_v60 = vpop.eup %3307 }
0x1e19   :  { %1896 = vrot.lane.b32.xlu1 %v3308_v60, %s3441_s1 }
0x1e89   :  { %v1895_v61 = vpop.permute.xlu0 %1894 }
0x1e8a   :  { %v3813_v63 = vmul.f32 %v3302_v14, %v1895_v61 }
0x1e8b   :  { %v1897_v62 = vpop.permute.xlu1 %1896 }
0x1e8c   :  { %v3811_v26 = vmul.f32 %v3304_v31, %v1897_v62 }
0x1e8e   :  { %v1914_v27 = vrot.slane %v3811_v26, 7 }
0x1e90   :  { %v1915_v0 = vsel %vm402_vm5, %v1914_v27, %v3813_v63 }
0x1e91   :  { %1916 = vrot.lane.b32.xlu1 %v1915_v0, %s3442_s21 }
0x1f03   :  { %v1917_v28 = vpop.permute.xlu1 %1916 }
0x1f04   :  { %3060 = vmatmul.mubr.msk.f32.vlgmr.msra.gmra.mxu1 %vm260_vm6, %v1917_v28 }
0x1f05   :  { %3074 = vmatpush3.msra.mxu1 %v3697_v32  ;;  %3081 = vmatprep.mubr.msk.f32.mxu1 %vm3440_vm1, %v3439_v11 }
0x1f06   :  { %3075 = vmatprep.subr.mxu1 %v3439_v11 }
0x1f07   :  { %3076 = vmatpush3.msra.mxu1 %v3701_v6 }
0x1f08   :  { %3077 = vmatprep.subr.mxu1 %v3439_v11 }
0x1f09   :  { %3078 = vmatpush3.msra.mxu1 %v3703_v50 }
0x1f0a   :  { %3079 = vmatprep.subr.mxu1 %v3439_v11 }
0x1f0b   :  { %3080 = vmatpush3.msra.mxu1 %v3708_v30 }
0x1f0c   :  { %3095 = vmatprep.subr.mxu1 %v3439_v11 }
0x1fc4   :  { %v1986_v2 = vpop.f32.mrf.mxu1 }
0x1fc5   :  { %v1991_v3 = vrot.slane %v1986_v2, 1  ;;  %v1994_v4 = vadd.f32 %v1986_v2, %v1912_v1 }
0x1fc6   :  { %v3061_v8 = vpop.f32.mrf.mxu1 }
0x1fc7   :  { %v1995_v9 = vadd.f32 %v1991_v3, %v1913_v7  ;;  %3309 = vtanh.f32 %v1994_v4  ;;  %v2767_v15 = vmul.f32 -1.442695, %v1994_v4 }
0x1fc9   :  { %3311 = vtanh.f32 %v1995_v9  ;;  %v2768_v16 = vmul.f32 -1.442695, %v1995_v9 }
0x1fca   :  { %3313 = vpow2.f32 %v2767_v15 }
0x1fcb   :  { %3315 = vpow2.f32 %v2768_v16 }
0x1fd4   :  { %v3310_v12 = vpop.eup %3309 }
0x1fd5   :  { %2014 = vrot.lane.b32.xlu1 %v3310_v12, %s3441_s1 }
0x1fd6   :  { %v3312_v13 = vpop.eup %3311 }
0x1fd7   :  { %2016 = vrot.lane.b32.xlu0 %v3312_v13, %s3441_s1  ;;  %v3314_v17 = vpop.eup %3313 }
0x1fd8   :  { %v3316_v18 = vpop.eup %3315  ;;  %v2002_v19 = vadd.f32 1.0, %v3314_v17 }
0x1fd9   :  { %v2003_v20 = vadd.f32 1.0, %v3316_v18 }
0x1fda   :  { %3317 = vrcp.f32 %v2002_v19 }
0x1fdb   :  { %3319 = vrcp.f32 %v2003_v20 }
0x1fe7   :  { %v3318_v21 = vpop.eup %3317 }
0x1fe8   :  { %v3320_v34 = vpop.eup %3319  ;;  %v2010_v37 = vmul.f32 %v3318_v21, %v1888_v56 }
0x1fe9   :  { %v2011_v40 = vmul.f32 %v3320_v34, %v1889_v25 }
0x2047   :  { %v2015_v24 = vpop.permute.xlu1 %2014 }
0x2048   :  { %v2020_v33 = vmul.f32 %v3318_v21, %v2015_v24 }
0x2049   :  { %v2017_v35 = vpop.permute.xlu0 %2016 }
0x204a   :  { %2024 = vrot.lane.b32.xlu1 %v2020_v33, %s3442_s21  ;;  %v2021_v36 = vmul.f32 %v3320_v34, %v2017_v35  ;;  %v2196_v35 = vld [vmem:[#allocation2 + $0x5] sm:$0x1] }
0x204c   :  { %2026 = vrot.lane.b32.xlu0 %v2021_v36, %s3442_s21 }
0x20bc   :  { %v2025_v38 = vpop.permute.xlu1 %2024 }
0x20bd   :  { %v2030_v39 = vadd.f32 %v2025_v38, %v2010_v37 }
0x20be   :  { %v2027_v41 = vpop.permute.xlu0 %2026 }
0x20bf   :  { %3321 = vtanh.f32 %v2030_v39  ;;  %v2031_v42 = vadd.f32 %v2027_v41, %v2011_v40 }
0x20c1   :  { %3323 = vtanh.f32 %v2031_v42 }
0x20cc   :  { %v3322_v43 = vpop.eup %3321 }
0x20cd   :  { %2036 = vrot.lane.b32.xlu1 %v3322_v43, %s3441_s1 }
0x20ce   :  { %v3324_v44 = vpop.eup %3323 }
0x20cf   :  { %2038 = vrot.lane.b32.xlu0 %v3324_v44, %s3441_s1 }
0x213f   :  { %v2037_v45 = vpop.permute.xlu1 %2036 }
0x2140   :  { %v3838_v48 = vmul.f32 %v3318_v21, %v2037_v45 }
0x2141   :  { %v2039_v46 = vpop.permute.xlu0 %2038 }
0x2142   :  { %v3836_v47 = vmul.f32 %v3320_v34, %v2039_v46 }
0x2144   :  { %v2056_v49 = vrot.slane %v3836_v47, 7 }
0x2146   :  { %v2057_v14 = vsel %vm402_vm5, %v2056_v49, %v3838_v48 }
0x2147   :  { %2058 = vrot.lane.b32.xlu0 %v2057_v14, %s3442_s21 }
0x21b9   :  { %v2059_v52 = vpop.permute.xlu0 %2058 }
0x21ba   :  { %3071 = vmatmul.mubr.msk.f32.vlgmr.msra.gmra.mxu0 %vm260_vm6, %v2059_v52 }
0x21bb   :  { %3085 = vmatpush3.msra.mxu0 %v3697_v32  ;;  %3092 = vmatprep.mubr.msk.f32.mxu0 %vm3440_vm1, %v3439_v11 }
0x21bc   :  { %3086 = vmatprep.subr.mxu0 %v3439_v11 }
0x21bd   :  { %3087 = vmatpush3.msra.mxu0 %v3701_v6 }
0x21be   :  { %3088 = vmatprep.subr.mxu0 %v3439_v11 }
0x21bf   :  { %3089 = vmatpush3.msra.mxu0 %v3703_v50 }
0x21c0   :  { %3090 = vmatprep.subr.mxu0 %v3439_v11 }
0x21c1   :  { %3091 = vmatpush3.msra.mxu0 %v3708_v30 }
0x227a   :  { %v2128_v31 = vpop.f32.mrf.mxu0 }
0x227b   :  { %v2133_v51 = vrot.slane %v2128_v31, 1  ;;  %v2136_v29 = vadd.f32 %v2128_v31, %v2054_v53 }
0x227c   :  { %v3072_v55 = vpop.f32.mrf.mxu0 }
0x227d   :  { %v2137_v56 = vadd.f32 %v2133_v51, %v2055_v54  ;;  %3325 = vtanh.f32 %v2136_v29  ;;  %v2770_v25 = vmul.f32 -1.442695, %v2136_v29 }
0x227f   :  { %3327 = vtanh.f32 %v2137_v56  ;;  %v2771_v59 = vmul.f32 -1.442695, %v2137_v56 }
0x2280   :  { %3329 = vpow2.f32 %v2770_v25 }
0x2281   :  { %3331 = vpow2.f32 %v2771_v59 }
0x228a   :  { %v3326_v57 = vpop.eup %3325 }
0x228b   :  { %2156 = vrot.lane.b32.xlu0 %v3326_v57, %s3441_s1 }
0x228c   :  { %v3328_v58 = vpop.eup %3327 }
0x228d   :  { %2158 = vrot.lane.b32.xlu1 %v3328_v58, %s3441_s1  ;;  %v3330_v60 = vpop.eup %3329 }
0x228e   :  { %v3332_v61 = vpop.eup %3331  ;;  %v2144_v62 = vadd.f32 1.0, %v3330_v60 }
0x228f   :  { %v2145_v27 = vadd.f32 1.0, %v3332_v61 }
0x2290   :  { %3333 = vrcp.f32 %v2144_v62 }
0x2291   :  { %3335 = vrcp.f32 %v2145_v27 }
0x229d   :  { %v3334_v0 = vpop.eup %3333 }
0x229e   :  { %v3336_v2 = vpop.eup %3335  ;;  %v2152_v7 = vmul.f32 %v3334_v0, %v2030_v39 }
0x229f   :  { %v2153_v12 = vmul.f32 %v3336_v2, %v2031_v42 }
0x22fd   :  { %v2157_v28 = vpop.permute.xlu0 %2156 }
0x22fe   :  { %v2162_v1 = vmul.f32 %v3334_v0, %v2157_v28  ;;  %v2338_v28 = vld [vmem:[#allocation2 + $0x6] sm:$0x1] }
0x22ff   :  { %v2159_v3 = vpop.permute.xlu1 %2158 }
0x2300   :  { %2166 = vrot.lane.b32.xlu0 %v2162_v1, %s3442_s21  ;;  %v2163_v4 = vmul.f32 %v3336_v2, %v2159_v3 }
0x2302   :  { %2168 = vrot.lane.b32.xlu1 %v2163_v4, %s3442_s21  ;;  %v2339_v4 = vld [vmem:[#allocation2 + $0xe] sm:$0x1] }
0x2372   :  { %v2167_v8 = vpop.permute.xlu0 %2166 }
0x2373   :  { %v2172_v9 = vadd.f32 %v2167_v8, %v2152_v7 }
0x2374   :  { %v2169_v13 = vpop.permute.xlu1 %2168 }
0x2375   :  { %3337 = vtanh.f32 %v2172_v9  ;;  %v2173_v15 = vadd.f32 %v2169_v13, %v2153_v12 }
0x2377   :  { %3339 = vtanh.f32 %v2173_v15 }
0x2382   :  { %v3338_v16 = vpop.eup %3337 }
0x2383   :  { %2178 = vrot.lane.b32.xlu0 %v3338_v16, %s3441_s1 }
0x2384   :  { %v3340_v17 = vpop.eup %3339 }
0x2385   :  { %2180 = vrot.lane.b32.xlu1 %v3340_v17, %s3441_s1 }
0x23f5   :  { %v2179_v18 = vpop.permute.xlu0 %2178 }
0x23f6   :  { %v3862_v21 = vmul.f32 %v3334_v0, %v2179_v18 }
0x23f7   :  { %v2181_v19 = vpop.permute.xlu1 %2180 }
0x23f8   :  { %v3860_v20 = vmul.f32 %v3336_v2, %v2181_v19 }
0x23fa   :  { %v2198_v24 = vrot.slane %v3860_v20, 7 }
0x23fc   :  { %v2199_v33 = vsel %vm402_vm5, %v2198_v24, %v3862_v21 }
0x23fd   :  { %2200 = vrot.lane.b32.xlu1 %v2199_v33, %s3442_s21 }
0x246f   :  { %v2201_v34 = vpop.permute.xlu1 %2200 }
0x2470   :  { %3082 = vmatmul.mubr.msk.f32.vlgmr.msra.gmra.mxu1 %vm260_vm6, %v2201_v34 }
0x2471   :  { %3096 = vmatpush3.msra.mxu1 %v3697_v32  ;;  %3103 = vmatprep.mubr.msk.f32.mxu1 %vm3440_vm1, %v3439_v11  ;;  %v2197_v32 = vld [vmem:[#allocation2 + $0xd] sm:$0x1] }
0x2472   :  { %3097 = vmatprep.subr.mxu1 %v3439_v11 }
0x2473   :  { %3098 = vmatpush3.msra.mxu1 %v3701_v6 }
0x2474   :  { %3099 = vmatprep.subr.mxu1 %v3439_v11 }
0x2475   :  { %3100 = vmatpush3.msra.mxu1 %v3703_v50 }
0x2476   :  { %3101 = vmatprep.subr.mxu1 %v3439_v11 }
0x2477   :  { %3102 = vmatpush3.msra.mxu1 %v3708_v30 }
0x2530   :  { %v2270_v36 = vpop.f32.mrf.mxu1 }
0x2531   :  { %v2275_v37 = vrot.slane %v2270_v36, 1  ;;  %v2278_v38 = vadd.f32 %v2270_v36, %v2196_v35 }
0x2532   :  { %v3083_v39 = vpop.f32.mrf.mxu1 }
0x2533   :  { %v2279_v40 = vadd.f32 %v2275_v37, %v2197_v32  ;;  %3341 = vtanh.f32 %v2278_v38  ;;  %v2773_v50 = vmul.f32 -1.442695, %v2278_v38 }
0x2535   :  { %3343 = vtanh.f32 %v2279_v40  ;;  %v2774_v42 = vmul.f32 -1.442695, %v2279_v40 }
0x2536   :  { %3345 = vpow2.f32 %v2773_v50 }
0x2537   :  { %3347 = vpow2.f32 %v2774_v42 }
0x2540   :  { %v3342_v41 = vpop.eup %3341 }
0x2541   :  { %2298 = vrot.lane.b32.xlu1 %v3342_v41, %s3441_s1 }
0x2542   :  { %v3344_v6 = vpop.eup %3343 }
0x2543   :  { %2300 = vrot.lane.b32.xlu0 %v3344_v6, %s3441_s1  ;;  %v3346_v11 = vpop.eup %3345 }
0x2544   :  { %v3348_v30 = vpop.eup %3347  ;;  %v2286_v43 = vadd.f32 1.0, %v3346_v11 }
0x2545   :  { %v2287_v44 = vadd.f32 1.0, %v3348_v30 }
0x2546   :  { %3349 = vrcp.f32 %v2286_v43 }
0x2547   :  { %3351 = vrcp.f32 %v2287_v44 }
0x2553   :  { %v3350_v45 = vpop.eup %3349 }
0x2554   :  { %v3352_v14 = vpop.eup %3351  ;;  %v2294_v31 = vmul.f32 %v3350_v45, %v2172_v9 }
0x2555   :  { %v2295_v54 = vmul.f32 %v3352_v14, %v2173_v15 }
0x25b3   :  { %v2299_v46 = vpop.permute.xlu1 %2298 }
0x25b4   :  { %v2304_v49 = vmul.f32 %v3350_v45, %v2299_v46 }
0x25b5   :  { %v2301_v52 = vpop.permute.xlu0 %2300 }
0x25b6   :  { %2308 = vrot.lane.b32.xlu1 %v2304_v49, %s3442_s21  ;;  %v2305_v53 = vmul.f32 %v3352_v14, %v2301_v52 }
0x25b8   :  { %2310 = vrot.lane.b32.xlu0 %v2305_v53, %s3442_s21 }
0x2628   :  { %v2309_v51 = vpop.permute.xlu1 %2308 }
0x2629   :  { %v2314_v29 = vadd.f32 %v2309_v51, %v2294_v31  ;;  %v2481_v51 = vld [vmem:[#allocation2 + $0xf] sm:$0x1] }
0x262a   :  { %v2311_v55 = vpop.permute.xlu0 %2310 }
0x262b   :  { %3353 = vtanh.f32 %v2314_v29  ;;  %v2315_v56 = vadd.f32 %v2311_v55, %v2295_v54 }
0x262d   :  { %3355 = vtanh.f32 %v2315_v56 }
0x2638   :  { %v3354_v57 = vpop.eup %3353 }
0x2639   :  { %2320 = vrot.lane.b32.xlu1 %v3354_v57, %s3441_s1 }
0x263a   :  { %v3356_v58 = vpop.eup %3355 }
0x263b   :  { %2322 = vrot.lane.b32.xlu0 %v3356_v58, %s3441_s1 }
0x26ab   :  { %v2321_v25 = vpop.permute.xlu1 %2320 }
0x26ac   :  { %v3886_v61 = vmul.f32 %v3350_v45, %v2321_v25 }
0x26ad   :  { %v2323_v59 = vpop.permute.xlu0 %2322 }
0x26ae   :  { %v3884_v60 = vmul.f32 %v3352_v14, %v2323_v59  ;;  %v2480_v14 = vld [vmem:[#allocation2 + $0x7] sm:$0x1] }
0x26b0   :  { %v2340_v62 = vrot.slane %v3884_v60, 7 }
0x26b2   :  { %v2341_v27 = vsel %vm402_vm5, %v2340_v62, %v3886_v61 }
0x26b3   :  { %2342 = vrot.lane.b32.xlu0 %v2341_v27, %s3442_s21 }
0x2725   :  { %v2343_v0 = vpop.permute.xlu0 %2342 }
0x2726   :  { %3093 = vmatmul.mubr.msk.f32.vlgmr.msra.gmra.mxu0 %vm260_vm6, %v2343_v0 }
0x27e6   :  { %v2412_v1 = vpop.f32.mrf.mxu0 }
0x27e7   :  { %v2417_v2 = vrot.slane %v2412_v1, 1  ;;  %v2420_v3 = vadd.f32 %v2412_v1, %v2338_v28 }
0x27e8   :  { %v3094_v7 = vpop.f32.mrf.mxu0 }
0x27e9   :  { %v2421_v8 = vadd.f32 %v2417_v2, %v2339_v4  ;;  %3357 = vtanh.f32 %v2420_v3  ;;  %v2776_v13 = vmul.f32 -1.442695, %v2420_v3 }
0x27eb   :  { %3359 = vtanh.f32 %v2421_v8  ;;  %v2777_v15 = vmul.f32 -1.442695, %v2421_v8 }
0x27ec   :  { %3361 = vpow2.f32 %v2776_v13 }
0x27ed   :  { %3363 = vpow2.f32 %v2777_v15 }
0x27f6   :  { %v3358_v9 = vpop.eup %3357 }
0x27f7   :  { %2440 = vrot.lane.b32.xlu0 %v3358_v9, %s3441_s1 }
0x27f8   :  { %v3360_v12 = vpop.eup %3359 }
0x27f9   :  { %2442 = vrot.lane.b32.xlu1 %v3360_v12, %s3441_s1  ;;  %v3362_v16 = vpop.eup %3361 }
0x27fa   :  { %v3364_v17 = vpop.eup %3363  ;;  %v2428_v18 = vadd.f32 1.0, %v3362_v16 }
0x27fb   :  { %v2429_v19 = vadd.f32 1.0, %v3364_v17 }
0x27fc   :  { %3365 = vrcp.f32 %v2428_v18 }
0x27fd   :  { %3367 = vrcp.f32 %v2429_v19 }
0x2809   :  { %v3366_v24 = vpop.eup %3365 }
0x280a   :  { %v3368_v35 = vpop.eup %3367  ;;  %v2436_v38 = vmul.f32 %v3366_v24, %v2314_v29 }
0x280b   :  { %v2437_v40 = vmul.f32 %v3368_v35, %v2315_v56 }
0x2869   :  { %v2441_v33 = vpop.permute.xlu0 %2440 }
0x286a   :  { %v2446_v34 = vmul.f32 %v3366_v24, %v2441_v33 }
0x286b   :  { %v2443_v36 = vpop.permute.xlu1 %2442 }
0x286c   :  { %2450 = vrot.lane.b32.xlu0 %v2446_v34, %s3442_s21  ;;  %v2447_v37 = vmul.f32 %v3368_v35, %v2443_v36 }
0x286e   :  { %2452 = vrot.lane.b32.xlu1 %v2447_v37, %s3442_s21 }
0x28de   :  { %v2451_v32 = vpop.permute.xlu0 %2450 }
0x28df   :  { %v2456_v39 = vadd.f32 %v2451_v32, %v2436_v38 }
0x28e0   :  { %v2453_v41 = vpop.permute.xlu1 %2452 }
0x28e1   :  { %3369 = vtanh.f32 %v2456_v39  ;;  %v2457_v6 = vadd.f32 %v2453_v41, %v2437_v40 }
0x28e3   :  { %3371 = vtanh.f32 %v2457_v6 }
0x28ee   :  { %v3370_v50 = vpop.eup %3369 }
0x28ef   :  { %2462 = vrot.lane.b32.xlu0 %v3370_v50, %s3441_s1 }
0x28f0   :  { %v3372_v42 = vpop.eup %3371 }
0x28f1   :  { %2464 = vrot.lane.b32.xlu1 %v3372_v42, %s3441_s1 }
0x2961   :  { %v2463_v11 = vpop.permute.xlu0 %2462 }
0x2962   :  { %v2468_v44 = vmul.f32 %v3366_v24, %v2463_v11  ;;  %v2781_v11 = vld [vmem:[#allocation6 + $0xf0] ss:$0 sm:$0xff] }
0x2963   :  { %v2465_v30 = vpop.permute.xlu1 %2464 }
0x2964   :  { %v2469_v43 = vmul.f32 %v3368_v35, %v2465_v30 }
0x2966   :  { %v2482_v45 = vrot.slane %v2469_v43, 7 }
0x2968   :  { %v2483_v46 = vsel %vm402_vm5, %v2482_v45, %v2468_v44 }
0x2969   :  { %2484 = vrot.lane.b32.xlu1 %v2483_v46, %s3442_s21 }
0x29db   :  { %v2485_v49 = vpop.permute.xlu1 %2484 }
0x29dc   :  { %3104 = vmatmul.mubr.msk.f32.vlgmr.msra.gmra.mxu1 %vm260_vm6, %v2485_v49 }
0x2a9c   :  { %v2554_v52 = vpop.f32.mrf.mxu1 }
0x2a9d   :  { %v2559_v53 = vrot.slane %v2554_v52, 1  ;;  %v2562_v31 = vadd.f32 %v2554_v52, %v2480_v14 }
0x2a9e   :  { %v3105_v29 = vpop.f32.mrf.mxu1 }
0x2a9f   :  { %v2563_v54 = vadd.f32 %v2559_v53, %v2481_v51  ;;  %3373 = vtanh.f32 %v2562_v31  ;;  %v2779_v57 = vmul.f32 -1.442695, %v2562_v31 }
0x2aa1   :  { %3375 = vtanh.f32 %v2563_v54  ;;  %v2780_v58 = vmul.f32 -1.442695, %v2563_v54 }
0x2aa2   :  { %3377 = vpow2.f32 %v2779_v57 }
0x2aa3   :  { %3379 = vpow2.f32 %v2780_v58 }
0x2aac   :  { %v3374_v55 = vpop.eup %3373 }
0x2aad   :  { %2582 = vrot.lane.b32.xlu0 %v3374_v55, %s3441_s1 }
0x2aae   :  { %v3376_v56 = vpop.eup %3375 }
0x2aaf   :  { %2584 = vrot.lane.b32.xlu1 %v3376_v56, %s3441_s1  ;;  %v3378_v25 = vpop.eup %3377 }
0x2ab0   :  { %v3380_v59 = vpop.eup %3379  ;;  %v2570_v62 = vadd.f32 1.0, %v3378_v25 }
0x2ab1   :  { %v2571_v27 = vadd.f32 1.0, %v3380_v59 }
0x2ab2   :  { %3381 = vrcp.f32 %v2570_v62 }
0x2ab3   :  { %3383 = vrcp.f32 %v2571_v27 }
0x2abf   :  { %v3382_v0 = vpop.eup %3381 }
0x2ac0   :  { %v3384_v2 = vpop.eup %3383  ;;  %v2578_v7 = vmul.f32 %v3382_v0, %v2456_v39 }
0x2ac1   :  { %v2579_v12 = vmul.f32 %v3384_v2, %v2457_v6 }
0x2b1f   :  { %v2583_v28 = vpop.permute.xlu0 %2582 }
0x2b20   :  { %v2588_v1 = vmul.f32 %v3382_v0, %v2583_v28 }
0x2b21   :  { %v2585_v3 = vpop.permute.xlu1 %2584 }
0x2b22   :  { %2592 = vrot.lane.b32.xlu0 %v2588_v1, %s3442_s21  ;;  %v2589_v4 = vmul.f32 %v3384_v2, %v2585_v3 }
0x2b24   :  { %2594 = vrot.lane.b32.xlu1 %v2589_v4, %s3442_s21 }
0x2b94   :  { %v2593_v8 = vpop.permute.xlu0 %2592 }
0x2b95   :  { %v2598_v9 = vadd.f32 %v2593_v8, %v2578_v7 }
0x2b96   :  { %v2595_v13 = vpop.permute.xlu1 %2594 }
0x2b97   :  { %3385 = vtanh.f32 %v2598_v9  ;;  %v2599_v15 = vadd.f32 %v2595_v13, %v2579_v12 }
0x2b99   :  { %3387 = vtanh.f32 %v2599_v15 }
0x2ba4   :  { %v3386_v16 = vpop.eup %3385 }
0x2ba5   :  { %2604 = vrot.lane.b32.xlu0 %v3386_v16, %s3441_s1 }
0x2ba6   :  { %v3388_v17 = vpop.eup %3387 }
0x2ba7   :  { %2606 = vrot.lane.b32.xlu1 %v3388_v17, %s3441_s1 }
0x2ba9   :  { %1620 = vrot.lane.b32.xlu0 %v3764_v5, %s3442_s21  ;;  %v2629_v5 = vld [vmem:[#allocation6 + $0xe8] sm:$0xff] }
0x2baa   :  { %3106 = vmatprep.subr.mxu0 %v2629_v5 }
0x2bab   :  { %1762 = vrot.lane.b32.xlu1 %v3788_v23, %s3442_s21  ;;  %v2628_v23 = vld [vmem:[#allocation6 + $0xe0] sm:$0xff]  ;;  %3107 = vmatpush3.msra.mxu0 %v2629_v5 }
0x2bac   :  { %3108 = vmatprep.subr.mxu0 %v2628_v23 }
0x2bad   :  { %1904 = vrot.lane.b32.xlu0 %v3813_v63, %s3442_s21  ;;  %3109 = vmatpush3.msra.mxu0 %v2628_v23  ;;  %v2626_v63 = vld [vmem:[#allocation6 + $0xd0] sm:$0xff] }
0x2baf   :  { %2046 = vrot.lane.b32.xlu1 %v3838_v48, %s3442_s21 }
0x2bb1   :  { %2188 = vrot.lane.b32.xlu0 %v3862_v21, %s3442_s21 }
0x2bb3   :  { %2330 = vrot.lane.b32.xlu1 %v3886_v61, %s3442_s21 }
0x2bb5   :  { %2472 = vrot.lane.b32.xlu0 %v2468_v44, %s3442_s21 }
0x2bb7   :  { %1764 = vrot.lane.b32.xlu1 %v3786_v22, %s3442_s21  ;;  %v2627_v22 = vld [vmem:[#allocation6 + $0xd8] sm:$0xff] }
0x2bb8   :  { %3110 = vmatprep.subr.mxu0 %v2627_v22 }
0x2bb9   :  { %1622 = vrot.lane.b32.xlu0 %v3761_v10, %s3442_s21  ;;  %3111 = vmatpush3.msra.mxu0 %v2627_v22 }
0x2bba   :  { %3112 = vmatprep.subr.mxu0 %v2626_v63 }
0x2bbb   :  { %2048 = vrot.lane.b32.xlu1 %v3836_v47, %s3442_s21  ;;  %3113 = vmatpush3.msra.mxu0 %v2626_v63 }
0x2bbd   :  { %1906 = vrot.lane.b32.xlu0 %v3811_v26, %s3442_s21 }
0x2bbf   :  { %2332 = vrot.lane.b32.xlu1 %v3884_v60, %s3442_s21 }
0x2bc1   :  { %2190 = vrot.lane.b32.xlu0 %v3860_v20, %s3442_s21 }
0x2bc5   :  { %2474 = vrot.lane.b32.xlu0 %v2469_v43, %s3442_s21 }
0x2c17   :  { %v2605_v10 = vpop.permute.xlu0 %2604 }
0x2c18   :  { %v2610_v26 = vmul.f32 %v3382_v0, %v2605_v10 }
0x2c19   :  { %v2607_v47 = vpop.permute.xlu1 %2606 }
0x2c1a   :  { %2614 = vrot.lane.b32.xlu1 %v2610_v26, %s3442_s21  ;;  %v2611_v20 = vmul.f32 %v3384_v2, %v2607_v47 }
0x2c1b   :  { %v1621_v48 = vpop.permute.xlu0 %1620 }
0x2c1c   :  { %1626 = vst.msk [vmem:[#allocation3] sm:$0x1] %vm396_vm7, %v1621_v48 }
0x2c1d   :  { %v1763_v21 = vpop.permute.xlu1 %1762 }
0x2c1e   :  { %2616 = vrot.lane.b32.xlu1 %v2611_v20, %s3442_s21  ;;  %1768 = vst.msk [vmem:[#allocation3 + $0x1] sm:$0x1] %vm396_vm7, %v1763_v21 }
0x2c1f   :  { %v1905_v60 = vpop.permute.xlu0 %1904 }
0x2c20   :  { %1910 = vst.msk [vmem:[#allocation3 + $0x2] sm:$0x1] %vm396_vm7, %v1905_v60 }
0x2c21   :  { %v2047_v61 = vpop.permute.xlu1 %2046 }
0x2c22   :  { %2052 = vst.msk [vmem:[#allocation3 + $0x3] sm:$0x1] %vm396_vm7, %v2047_v61 }
0x2c23   :  { %v2189_v18 = vpop.permute.xlu0 %2188 }
0x2c24   :  { %2194 = vst.msk [vmem:[#allocation3 + $0x4] sm:$0x1] %vm396_vm7, %v2189_v18 }
0x2c25   :  { %v2331_v19 = vpop.permute.xlu1 %2330 }
0x2c26   :  { %2336 = vst.msk [vmem:[#allocation3 + $0x5] sm:$0x1] %vm396_vm7, %v2331_v19 }
0x2c27   :  { %v2473_v24 = vpop.permute.xlu0 %2472 }
0x2c28   :  { %2478 = vst.msk [vmem:[#allocation3 + $0x6] sm:$0x1] %vm396_vm7, %v2473_v24 }
0x2c29   :  { %v1765_v33 = vpop.permute.xlu1 %1764 }
0x2c2a   :  { %1769 = vst.msk [vmem:[#allocation3 + $0x9] sm:$0x1] %vm396_vm7, %v1765_v33 }
0x2c2b   :  { %v1623_v34 = vpop.permute.xlu0 %1622 }
0x2c2c   :  { %1627 = vst.msk [vmem:[#allocation3 + $0x8] sm:$0x1] %vm396_vm7, %v1623_v34 }
0x2c2d   :  { %v2049_v35 = vpop.permute.xlu1 %2048 }
0x2c2e   :  { %2053 = vst.msk [vmem:[#allocation3 + $0xb] sm:$0x1] %vm396_vm7, %v2049_v35 }
0x2c2f   :  { %v1907_v36 = vpop.permute.xlu0 %1906 }
0x2c30   :  { %1911 = vst.msk [vmem:[#allocation3 + $0xa] sm:$0x1] %vm396_vm7, %v1907_v36 }
0x2c31   :  { %v2333_v37 = vpop.permute.xlu1 %2332 }
0x2c32   :  { %2337 = vst.msk [vmem:[#allocation3 + $0xd] sm:$0x1] %vm396_vm7, %v2333_v37 }
0x2c33   :  { %v2191_v38 = vpop.permute.xlu0 %2190 }
0x2c34   :  { %2195 = vst.msk [vmem:[#allocation3 + $0xc] sm:$0x1] %vm396_vm7, %v2191_v38 }
0x2c37   :  { %v2475_v32 = vpop.permute.xlu0 %2474 }
0x2c38   :  { %2479 = vst.msk [vmem:[#allocation3 + $0xe] sm:$0x1] %vm396_vm7, %v2475_v32 }
0x2c8c   :  { %v2615_v39 = vpop.permute.xlu1 %2614 }
0x2c8d   :  { %2620 = vst.msk [vmem:[#allocation3 + $0x7] sm:$0x1] %vm396_vm7, %v2615_v39 }
0x2c90   :  { %v2617_v40 = vpop.permute.xlu1 %2616 }
0x2c91   :  { %2621 = vst.msk [vmem:[#allocation3 + $0xf] sm:$0x1] %vm396_vm7, %v2617_v40 }
0x2c94   :  { %v2622_v41 = vld [vmem:[#allocation3] sm:$0xff] }
0x2c95   :  { %v2624_v6 = vmax.f32 %v2622_v41, 0.0 }
0x2c97   :  { %3114 = vmatprep.mubr.msk.f32.mxu0 %vm260_vm6, %v2624_v6 }
0x2c98   :  { %v2623_v50 = vld [vmem:[#allocation3 + $0x8] sm:$0xff] }
0x2c99   :  { %v2625_v42 = vmax.f32 %v2623_v50, 0.0 }
0x2c9b   :  { %3115 = vmatmul.mubr.msk.f32.vlgmr.msra.gmra.mxu0 %vm260_vm6, %v2625_v42 }
0x2d5b   :  { %v3116_v30 = vpop.f32.mrf.mxu0 }
0x2d5c   :  { %v2713_v43 = vadd.f32 %v3116_v30, %v2781_v11 }
0x2d5d   :  { %v2707_v44 = vpop.f32.mrf.mxu0 }
0x2d5e   :  { %2717 = vst [vmem:[%s3962_s2 + $0x8] sm:$0xff] %v2713_v43  ;;  %v2708_v45 = vadd.f32 %v2781_v11, %v2707_v44 }
0x2d60   :  { %2716 = vst [vmem:[%s3962_s2] sm:$0xff] %v2708_v45 }
0x2d61   :  { %2722 = vsyncpa [#allocation5], 1 }
0x2d62   :  { %2723 = vsyncpa [#allocation7], 1 }

</bundles_post_ra>
